<compile_context>
chip_gen: v7x
topology: tpu7x:2x2x1
jax: 0.10.0
libtpu: 0.0.40
codegen_flags: <defaults>
</compile_context>

<pallas_src>
import functools

import jax
import jax.numpy as jnp
from jax.experimental import pallas as pl
from jax.experimental.pallas import tpu as pltpu

_EPS = 1e-5


def _conv_block_kernel(x_ref, m_ref, w1_ref, g1_ref, be1_ref,
                       w2_ref, g2_ref, be2_ref, out_ref,
                       *, N, H, W, Cin, C1, C2):
    HW = H * W
    P = N * HW
    masks = m_ref[...]                                    # (9, P) bf16, values {0, 1}

    def conv3x3(z, w_ref):
        """SAME 3x3 conv in flipped orientation: z (C, P) bf16 -> (Cout, P) f32.

        Tap (oy, ox) of the padded image is a static lane shift of the flat
        activation (within-image shifts never cross the n*HW boundaries for
        valid positions) times a {0,1} border mask; each tap is contracted on
        the MXU with f32 accumulation and full 512-lane output width.
        """
        acc = None
        for k in range(9):
            oy, ox = k // 3 - 1, k % 3 - 1                # offsets in {-1, 0, 1}
            d = oy * W + ox                               # flat lane offset of the tap
            t = z if d == 0 else jnp.roll(z, -d, axis=1)  # t[:, p] = z[:, p + d]
            t = t * masks[k]                              # zero padding at the 1-px border
            contrib = jnp.dot(w_ref[k], t, preferred_element_type=jnp.float32)
            acc = contrib if acc is None else acc + contrib
        return acc                                        # (Cout, P): 8 sublanes x 512 lanes

    def bn_relu(acc, g_ref, be_ref):
        """Training-mode BatchNorm (batch stats, biased var, eps=1e-5) + ReLU."""
        mean = jnp.sum(acc, axis=1, keepdims=True) * (1.0 / P)                 # (Cout, 1)
        centered = acc - mean
        var = jnp.sum(centered * centered, axis=1, keepdims=True) * (1.0 / P)  # two-pass var
        scale = g_ref[...] * jax.lax.rsqrt(var + _EPS)                         # (Cout, 1)
        return jnp.maximum(centered * scale + be_ref[...], 0.0)

    # ---------------- stage 1: conv1 + BN1 + ReLU ----------------
    x = x_ref[...].astype(jnp.bfloat16)                            # (N, Cin, HW)
    xb = jnp.concatenate([x[n] for n in range(N)], axis=1)         # (Cin, P) lane-aligned concat
    y1 = bn_relu(conv3x3(xb, w1_ref), g1_ref, be1_ref)             # (C1, P) f32, VMEM-resident

    # ---------------- stage 2: conv2 + BN2 + ReLU ----------------
    y2 = bn_relu(conv3x3(y1.astype(jnp.bfloat16), w2_ref), g2_ref, be2_ref)   # (C2, P) f32

    # ------- NCHW-ready store: (C2, P) is already (C2, H*W) per image -------
    for n in range(N):                                    # 256-lane-aligned full-row stores
        out_ref[n, :, :] = y2[:, n * HW:(n + 1) * HW]


def conv_block_forward(x_nchw, params):
    """Matches conv_block.forward: NCHW in, NCHW out (training-mode BN stats)."""
    N, Cin, H, W = x_nchw.shape
    C1 = params["w1"].shape[-1]
    C2 = params["w2"].shape[-1]
    HW, P = H * W, N * H * W

    # No wrapper transpose: NCHW -> (N, C, H*W) is a free contiguous reshape.
    x_flat = x_nchw.reshape(N, Cin, HW).astype(jnp.float32)

    # Weights as (9, Cout, Cin) bf16 for the flipped per-tap matmuls;
    # BN affine params as (Cout, 1) f32 (broadcast over the P lane axis).
    w1 = jnp.transpose(params["w1"], (0, 1, 3, 2)).reshape(9, C1, Cin).astype(jnp.bfloat16)
    w2 = jnp.transpose(params["w2"], (0, 1, 3, 2)).reshape(9, C2, C1).astype(jnp.bfloat16)
    g1 = params["g1"].reshape(C1, 1).astype(jnp.float32)
    be1 = params["be1"].reshape(C1, 1).astype(jnp.float32)
    g2 = params["g2"].reshape(C2, 1).astype(jnp.float32)
    be2 = params["be2"].reshape(C2, 1).astype(jnp.float32)
    # NOTE: conv biases params["b1"], params["b2"] are NOT passed to the kernel:
    # training-mode BatchNorm subtracts the batch mean, which cancels a constant
    # per-channel bias exactly.  (Re-add them if eval-mode BN is ever needed.)

    # Precomputed {0,1} tap-validity masks over the flattened (n, h, w) lane axis:
    # tap (oy, ox) contributes at p iff 0 <= h+oy < H and 0 <= w+ox < W.
    pos = jnp.arange(P, dtype=jnp.int32)
    hh = (pos // W) % H
    ww = pos % W
    mk = []
    for k in range(9):
        oy, ox = k // 3 - 1, k % 3 - 1
        mk.append((hh + oy >= 0) & (hh + oy < H) & (ww + ox >= 0) & (ww + ox < W))
    masks = jnp.stack(mk, axis=0).astype(jnp.bfloat16)             # (9, P)

    vmem = pl.BlockSpec(memory_space=pltpu.MemorySpace.VMEM)
    out = pl.pallas_call(
        functools.partial(_conv_block_kernel,
                          N=N, H=H, W=W, Cin=Cin, C1=C1, C2=C2),
        out_shape=jax.ShapeDtypeStruct((N, C2, HW), jnp.float32),
        in_specs=[vmem] * 8,
        out_specs=vmem,
    )(x_flat, masks, w1, g1, be1, w2, g2, be2)

    # (N, C, H*W) -> (N, C, H, W): pure reshape, no transpose, no extra HBM pass.
    return out.reshape(N, C2, H, W)


# ----------------------------- pure-JAX reference ----------------------------
def _ref_stage(x, w, b, g, be):
    y = jax.lax.conv_general_dilated(
        x, w, window_strides=(1, 1), padding="SAME",
        dimension_numbers=("NHWC", "HWIO", "NHWC"))
    y = y + b
    mean = jnp.mean(y, axis=(0, 1, 2), keepdims=True)
    var = jnp.mean((y - mean) ** 2, axis=(0, 1, 2), keepdims=True)
    y = (y - mean) * jax.lax.rsqrt(var + _EPS) * g + be
    return jnp.maximum(y, 0.0)


def _reference(x_nchw, params):
    x = jnp.transpose(x_nchw, (0, 2, 3, 1))
    x = _ref_stage(x, params["w1"], params["b1"], params["g1"], params["be1"])
    x = _ref_stage(x, params["w2"], params["b2"], params["g2"], params["be2"])
    return jnp.transpose(x, (0, 3, 1, 2))


if __name__ == "__main__":
    N, in_c, H, W = 2, 4, 16, 16
    out_c = 8

    key = jax.random.PRNGKey(0)
    k_x, k_w1, k_b1, k_w2, k_b2 = jax.random.split(key, 5)

    x = jax.random.normal(k_x, (N, in_c, H, W), jnp.float32)

    # Shapes follow nn.Conv2d (weights given in HWIO) / nn.BatchNorm2d defaults.
    params = {
        "w1": 0.1 * jax.random.normal(k_w1, (3, 3, in_c, out_c), jnp.float32),
        "b1": 0.05 * jax.random.normal(k_b1, (out_c,), jnp.float32),
        "g1": jnp.ones((out_c,), jnp.float32),
        "be1": jnp.zeros((out_c,), jnp.float32),
        "w2": 0.1 * jax.random.normal(k_w2, (3, 3, out_c, out_c), jnp.float32),
        "b2": 0.05 * jax.random.normal(k_b2, (out_c,), jnp.float32),
        "g2": jnp.ones((out_c,), jnp.float32),
        "be2": jnp.zeros((out_c,), jnp.float32),
    }

    out = jax.block_until_ready(conv_block_forward(x, params))
    ref = jax.block_until_ready(_reference(x, params))

    assert out.shape == (N, out_c, H, W), out.shape
    # bf16 MXU operands (f32 accumulate) over two stacked conv+BN layers:
    # compare at a bf16-appropriate tolerance.
    max_err = float(jnp.max(jnp.abs(out - ref)))
    rms_err = float(jnp.sqrt(jnp.mean((out - ref) ** 2)))
    assert max_err < 5e-2, (max_err, rms_err)
    assert rms_err < 1e-2, (max_err, rms_err)

    print("KERNEL_OK")
</pallas_src>

<mosaic_0001>
module attributes {stable_mosaic.version = 11 : i64} {
  func.func @_conv_block_kernel(%arg0: memref<2x4x256xf32, #tpu.memory_space<vmem>>, %arg1: memref<9x512xbf16, #tpu.memory_space<vmem>>, %arg2: memref<9x8x4xbf16, #tpu.memory_space<vmem>>, %arg3: memref<8x1xf32, #tpu.memory_space<vmem>>, %arg4: memref<8x1xf32, #tpu.memory_space<vmem>>, %arg5: memref<9x8x8xbf16, #tpu.memory_space<vmem>>, %arg6: memref<8x1xf32, #tpu.memory_space<vmem>>, %arg7: memref<8x1xf32, #tpu.memory_space<vmem>>, %arg8: memref<2x8x256xf32, #tpu.memory_space<vmem>>) attributes {dimension_semantics = [], scalar_prefetch = 0 : i64, scratch_operands = 0 : i64, tpu.core_type = #tpu.core_type<tc>} {
    %c0 = arith.constant 0 : index
    %c0_0 = arith.constant 0 : index
    %0 = vector.load %arg1[%c0, %c0_0] : memref<9x512xbf16, #tpu.memory_space<vmem>>, vector<9x512xbf16>
    %c0_1 = arith.constant 0 : index
    %c0_2 = arith.constant 0 : index
    %c0_3 = arith.constant 0 : index
    %1 = vector.load %arg0[%c0_1, %c0_2, %c0_3] : memref<2x4x256xf32, #tpu.memory_space<vmem>>, vector<2x4x256xf32>
    %2 = arith.truncf %1 : vector<2x4x256xf32> to vector<2x4x256xbf16>
    %3 = vector.extract_strided_slice %2 {offsets = [0, 0, 0], sizes = [1, 4, 256], strides = [1, 1, 1]} : vector<2x4x256xbf16> to vector<1x4x256xbf16>
    %4 = vector.shape_cast %3 : vector<1x4x256xbf16> to vector<4x256xbf16>
    %5 = vector.extract_strided_slice %2 {offsets = [1, 0, 0], sizes = [1, 4, 256], strides = [1, 1, 1]} : vector<2x4x256xbf16> to vector<1x4x256xbf16>
    %6 = vector.shape_cast %5 : vector<1x4x256xbf16> to vector<4x256xbf16>
    %7 = tpu.concatenate %4, %6 in 1 : vector<4x256xbf16>, vector<4x256xbf16> -> vector<4x512xbf16>
    %8 = vector.extract_strided_slice %7 {offsets = [0, 495], sizes = [4, 17], strides = [1, 1]} : vector<4x512xbf16> to vector<4x17xbf16>
    %9 = vector.extract_strided_slice %7 {offsets = [0, 0], sizes = [4, 495], strides = [1, 1]} : vector<4x512xbf16> to vector<4x495xbf16>
    %10 = tpu.concatenate %8, %9 in 1 : vector<4x17xbf16>, vector<4x495xbf16> -> vector<4x512xbf16>
    %11 = vector.extract_strided_slice %0 {offsets = [0, 0], sizes = [1, 512], strides = [1, 1]} : vector<9x512xbf16> to vector<1x512xbf16>
    %12 = vector.shape_cast %11 : vector<1x512xbf16> to vector<512xbf16>
    %13 = vector.shape_cast %12 : vector<512xbf16> to vector<1x512xbf16>
    %14 = vector.broadcast %13 : vector<1x512xbf16> to vector<4x512xbf16>
    %15 = arith.mulf %10, %14 : vector<4x512xbf16>
    %c0_4 = arith.constant 0 : index
    %c0_5 = arith.constant 0 : index
    %c0_6 = arith.constant 0 : index
    %16 = vector.load %arg2[%c0_4, %c0_5, %c0_6] : memref<9x8x4xbf16, #tpu.memory_space<vmem>>, vector<1x8x4xbf16>
    %17 = vector.shape_cast %16 : vector<1x8x4xbf16> to vector<8x4xbf16>
    %cst = arith.constant dense<0.000000e+00> : vector<8x512xf32>
    %18 = tpu.matmul %17, %15, %cst {dimension_numbers = #tpu.dot_dimension_numbers<[1], [0], [0], [1], [0, 0, 1, 1], [], []>} : vector<8x4xbf16>, vector<4x512xbf16>, vector<8x512xf32> -> vector<8x512xf32>
    %19 = vector.extract_strided_slice %7 {offsets = [0, 496], sizes = [4, 16], strides = [1, 1]} : vector<4x512xbf16> to vector<4x16xbf16>
    %20 = vector.extract_strided_slice %7 {offsets = [0, 0], sizes = [4, 496], strides = [1, 1]} : vector<4x512xbf16> to vector<4x496xbf16>
    %21 = tpu.concatenate %19, %20 in 1 : vector<4x16xbf16>, vector<4x496xbf16> -> vector<4x512xbf16>
    %22 = vector.extract_strided_slice %0 {offsets = [1, 0], sizes = [1, 512], strides = [1, 1]} : vector<9x512xbf16> to vector<1x512xbf16>
    %23 = vector.shape_cast %22 : vector<1x512xbf16> to vector<512xbf16>
    %24 = vector.shape_cast %23 : vector<512xbf16> to vector<1x512xbf16>
    %25 = vector.broadcast %24 : vector<1x512xbf16> to vector<4x512xbf16>
    %26 = arith.mulf %21, %25 : vector<4x512xbf16>
    %c1 = arith.constant 1 : index
    %c0_7 = arith.constant 0 : index
    %c0_8 = arith.constant 0 : index
    %27 = vector.load %arg2[%c1, %c0_7, %c0_8] : memref<9x8x4xbf16, #tpu.memory_space<vmem>>, vector<1x8x4xbf16>
    %28 = vector.shape_cast %27 : vector<1x8x4xbf16> to vector<8x4xbf16>
    %cst_9 = arith.constant dense<0.000000e+00> : vector<8x512xf32>
    %29 = tpu.matmul %28, %26, %cst_9 {dimension_numbers = #tpu.dot_dimension_numbers<[1], [0], [0], [1], [0, 0, 1, 1], [], []>} : vector<8x4xbf16>, vector<4x512xbf16>, vector<8x512xf32> -> vector<8x512xf32>
    %30 = arith.addf %18, %29 : vector<8x512xf32>
    %31 = vector.extract_strided_slice %7 {offsets = [0, 497], sizes = [4, 15], strides = [1, 1]} : vector<4x512xbf16> to vector<4x15xbf16>
    %32 = vector.extract_strided_slice %7 {offsets = [0, 0], sizes = [4, 497], strides = [1, 1]} : vector<4x512xbf16> to vector<4x497xbf16>
    %33 = tpu.concatenate %31, %32 in 1 : vector<4x15xbf16>, vector<4x497xbf16> -> vector<4x512xbf16>
    %34 = vector.extract_strided_slice %0 {offsets = [2, 0], sizes = [1, 512], strides = [1, 1]} : vector<9x512xbf16> to vector<1x512xbf16>
    %35 = vector.shape_cast %34 : vector<1x512xbf16> to vector<512xbf16>
    %36 = vector.shape_cast %35 : vector<512xbf16> to vector<1x512xbf16>
    %37 = vector.broadcast %36 : vector<1x512xbf16> to vector<4x512xbf16>
    %38 = arith.mulf %33, %37 : vector<4x512xbf16>
    %c2 = arith.constant 2 : index
    %c0_10 = arith.constant 0 : index
    %c0_11 = arith.constant 0 : index
    %39 = vector.load %arg2[%c2, %c0_10, %c0_11] : memref<9x8x4xbf16, #tpu.memory_space<vmem>>, vector<1x8x4xbf16>
    %40 = vector.shape_cast %39 : vector<1x8x4xbf16> to vector<8x4xbf16>
    %cst_12 = arith.constant dense<0.000000e+00> : vector<8x512xf32>
    %41 = tpu.matmul %40, %38, %cst_12 {dimension_numbers = #tpu.dot_dimension_numbers<[1], [0], [0], [1], [0, 0, 1, 1], [], []>} : vector<8x4xbf16>, vector<4x512xbf16>, vector<8x512xf32> -> vector<8x512xf32>
    %42 = arith.addf %30, %41 : vector<8x512xf32>
    %43 = vector.extract_strided_slice %7 {offsets = [0, 511], sizes = [4, 1], strides = [1, 1]} : vector<4x512xbf16> to vector<4x1xbf16>
    %44 = vector.extract_strided_slice %7 {offsets = [0, 0], sizes = [4, 511], strides = [1, 1]} : vector<4x512xbf16> to vector<4x511xbf16>
    %45 = tpu.concatenate %43, %44 in 1 : vector<4x1xbf16>, vector<4x511xbf16> -> vector<4x512xbf16>
    %46 = vector.extract_strided_slice %0 {offsets = [3, 0], sizes = [1, 512], strides = [1, 1]} : vector<9x512xbf16> to vector<1x512xbf16>
    %47 = vector.shape_cast %46 : vector<1x512xbf16> to vector<512xbf16>
    %48 = vector.shape_cast %47 : vector<512xbf16> to vector<1x512xbf16>
    %49 = vector.broadcast %48 : vector<1x512xbf16> to vector<4x512xbf16>
    %50 = arith.mulf %45, %49 : vector<4x512xbf16>
    %c3 = arith.constant 3 : index
    %c0_13 = arith.constant 0 : index
    %c0_14 = arith.constant 0 : index
    %51 = vector.load %arg2[%c3, %c0_13, %c0_14] : memref<9x8x4xbf16, #tpu.memory_space<vmem>>, vector<1x8x4xbf16>
    %52 = vector.shape_cast %51 : vector<1x8x4xbf16> to vector<8x4xbf16>
    %cst_15 = arith.constant dense<0.000000e+00> : vector<8x512xf32>
    %53 = tpu.matmul %52, %50, %cst_15 {dimension_numbers = #tpu.dot_dimension_numbers<[1], [0], [0], [1], [0, 0, 1, 1], [], []>} : vector<8x4xbf16>, vector<4x512xbf16>, vector<8x512xf32> -> vector<8x512xf32>
    %54 = arith.addf %42, %53 : vector<8x512xf32>
    %55 = vector.extract_strided_slice %0 {offsets = [4, 0], sizes = [1, 512], strides = [1, 1]} : vector<9x512xbf16> to vector<1x512xbf16>
    %56 = vector.shape_cast %55 : vector<1x512xbf16> to vector<512xbf16>
    %57 = vector.shape_cast %56 : vector<512xbf16> to vector<1x512xbf16>
    %58 = vector.broadcast %57 : vector<1x512xbf16> to vector<4x512xbf16>
    %59 = arith.mulf %7, %58 : vector<4x512xbf16>
    %c4 = arith.constant 4 : index
    %c0_16 = arith.constant 0 : index
    %c0_17 = arith.constant 0 : index
    %60 = vector.load %arg2[%c4, %c0_16, %c0_17] : memref<9x8x4xbf16, #tpu.memory_space<vmem>>, vector<1x8x4xbf16>
    %61 = vector.shape_cast %60 : vector<1x8x4xbf16> to vector<8x4xbf16>
    %cst_18 = arith.constant dense<0.000000e+00> : vector<8x512xf32>
    %62 = tpu.matmul %61, %59, %cst_18 {dimension_numbers = #tpu.dot_dimension_numbers<[1], [0], [0], [1], [0, 0, 1, 1], [], []>} : vector<8x4xbf16>, vector<4x512xbf16>, vector<8x512xf32> -> vector<8x512xf32>
    %63 = arith.addf %54, %62 : vector<8x512xf32>
    %64 = vector.extract_strided_slice %7 {offsets = [0, 1], sizes = [4, 511], strides = [1, 1]} : vector<4x512xbf16> to vector<4x511xbf16>
    %65 = vector.extract_strided_slice %7 {offsets = [0, 0], sizes = [4, 1], strides = [1, 1]} : vector<4x512xbf16> to vector<4x1xbf16>
    %66 = tpu.concatenate %64, %65 in 1 : vector<4x511xbf16>, vector<4x1xbf16> -> vector<4x512xbf16>
    %67 = vector.extract_strided_slice %0 {offsets = [5, 0], sizes = [1, 512], strides = [1, 1]} : vector<9x512xbf16> to vector<1x512xbf16>
    %68 = vector.shape_cast %67 : vector<1x512xbf16> to vector<512xbf16>
    %69 = vector.shape_cast %68 : vector<512xbf16> to vector<1x512xbf16>
    %70 = vector.broadcast %69 : vector<1x512xbf16> to vector<4x512xbf16>
    %71 = arith.mulf %66, %70 : vector<4x512xbf16>
    %c5 = arith.constant 5 : index
    %c0_19 = arith.constant 0 : index
    %c0_20 = arith.constant 0 : index
    %72 = vector.load %arg2[%c5, %c0_19, %c0_20] : memref<9x8x4xbf16, #tpu.memory_space<vmem>>, vector<1x8x4xbf16>
    %73 = vector.shape_cast %72 : vector<1x8x4xbf16> to vector<8x4xbf16>
    %cst_21 = arith.constant dense<0.000000e+00> : vector<8x512xf32>
    %74 = tpu.matmul %73, %71, %cst_21 {dimension_numbers = #tpu.dot_dimension_numbers<[1], [0], [0], [1], [0, 0, 1, 1], [], []>} : vector<8x4xbf16>, vector<4x512xbf16>, vector<8x512xf32> -> vector<8x512xf32>
    %75 = arith.addf %63, %74 : vector<8x512xf32>
    %76 = vector.extract_strided_slice %7 {offsets = [0, 15], sizes = [4, 497], strides = [1, 1]} : vector<4x512xbf16> to vector<4x497xbf16>
    %77 = vector.extract_strided_slice %7 {offsets = [0, 0], sizes = [4, 15], strides = [1, 1]} : vector<4x512xbf16> to vector<4x15xbf16>
    %78 = tpu.concatenate %76, %77 in 1 : vector<4x497xbf16>, vector<4x15xbf16> -> vector<4x512xbf16>
    %79 = vector.extract_strided_slice %0 {offsets = [6, 0], sizes = [1, 512], strides = [1, 1]} : vector<9x512xbf16> to vector<1x512xbf16>
    %80 = vector.shape_cast %79 : vector<1x512xbf16> to vector<512xbf16>
    %81 = vector.shape_cast %80 : vector<512xbf16> to vector<1x512xbf16>
    %82 = vector.broadcast %81 : vector<1x512xbf16> to vector<4x512xbf16>
    %83 = arith.mulf %78, %82 : vector<4x512xbf16>
    %c6 = arith.constant 6 : index
    %c0_22 = arith.constant 0 : index
    %c0_23 = arith.constant 0 : index
    %84 = vector.load %arg2[%c6, %c0_22, %c0_23] : memref<9x8x4xbf16, #tpu.memory_space<vmem>>, vector<1x8x4xbf16>
    %85 = vector.shape_cast %84 : vector<1x8x4xbf16> to vector<8x4xbf16>
    %cst_24 = arith.constant dense<0.000000e+00> : vector<8x512xf32>
    %86 = tpu.matmul %85, %83, %cst_24 {dimension_numbers = #tpu.dot_dimension_numbers<[1], [0], [0], [1], [0, 0, 1, 1], [], []>} : vector<8x4xbf16>, vector<4x512xbf16>, vector<8x512xf32> -> vector<8x512xf32>
    %87 = arith.addf %75, %86 : vector<8x512xf32>
    %88 = vector.extract_strided_slice %7 {offsets = [0, 16], sizes = [4, 496], strides = [1, 1]} : vector<4x512xbf16> to vector<4x496xbf16>
    %89 = vector.extract_strided_slice %7 {offsets = [0, 0], sizes = [4, 16], strides = [1, 1]} : vector<4x512xbf16> to vector<4x16xbf16>
    %90 = tpu.concatenate %88, %89 in 1 : vector<4x496xbf16>, vector<4x16xbf16> -> vector<4x512xbf16>
    %91 = vector.extract_strided_slice %0 {offsets = [7, 0], sizes = [1, 512], strides = [1, 1]} : vector<9x512xbf16> to vector<1x512xbf16>
    %92 = vector.shape_cast %91 : vector<1x512xbf16> to vector<512xbf16>
    %93 = vector.shape_cast %92 : vector<512xbf16> to vector<1x512xbf16>
    %94 = vector.broadcast %93 : vector<1x512xbf16> to vector<4x512xbf16>
    %95 = arith.mulf %90, %94 : vector<4x512xbf16>
    %c7 = arith.constant 7 : index
    %c0_25 = arith.constant 0 : index
    %c0_26 = arith.constant 0 : index
    %96 = vector.load %arg2[%c7, %c0_25, %c0_26] : memref<9x8x4xbf16, #tpu.memory_space<vmem>>, vector<1x8x4xbf16>
    %97 = vector.shape_cast %96 : vector<1x8x4xbf16> to vector<8x4xbf16>
    %cst_27 = arith.constant dense<0.000000e+00> : vector<8x512xf32>
    %98 = tpu.matmul %97, %95, %cst_27 {dimension_numbers = #tpu.dot_dimension_numbers<[1], [0], [0], [1], [0, 0, 1, 1], [], []>} : vector<8x4xbf16>, vector<4x512xbf16>, vector<8x512xf32> -> vector<8x512xf32>
    %99 = arith.addf %87, %98 : vector<8x512xf32>
    %100 = vector.extract_strided_slice %7 {offsets = [0, 17], sizes = [4, 495], strides = [1, 1]} : vector<4x512xbf16> to vector<4x495xbf16>
    %101 = vector.extract_strided_slice %7 {offsets = [0, 0], sizes = [4, 17], strides = [1, 1]} : vector<4x512xbf16> to vector<4x17xbf16>
    %102 = tpu.concatenate %100, %101 in 1 : vector<4x495xbf16>, vector<4x17xbf16> -> vector<4x512xbf16>
    %103 = vector.extract_strided_slice %0 {offsets = [8, 0], sizes = [1, 512], strides = [1, 1]} : vector<9x512xbf16> to vector<1x512xbf16>
    %104 = vector.shape_cast %103 : vector<1x512xbf16> to vector<512xbf16>
    %105 = vector.shape_cast %104 : vector<512xbf16> to vector<1x512xbf16>
    %106 = vector.broadcast %105 : vector<1x512xbf16> to vector<4x512xbf16>
    %107 = arith.mulf %102, %106 : vector<4x512xbf16>
    %c8 = arith.constant 8 : index
    %c0_28 = arith.constant 0 : index
    %c0_29 = arith.constant 0 : index
    %108 = vector.load %arg2[%c8, %c0_28, %c0_29] : memref<9x8x4xbf16, #tpu.memory_space<vmem>>, vector<1x8x4xbf16>
    %109 = vector.shape_cast %108 : vector<1x8x4xbf16> to vector<8x4xbf16>
    %cst_30 = arith.constant dense<0.000000e+00> : vector<8x512xf32>
    %110 = tpu.matmul %109, %107, %cst_30 {dimension_numbers = #tpu.dot_dimension_numbers<[1], [0], [0], [1], [0, 0, 1, 1], [], []>} : vector<8x4xbf16>, vector<4x512xbf16>, vector<8x512xf32> -> vector<8x512xf32>
    %111 = arith.addf %99, %110 : vector<8x512xf32>
    %cst_31 = arith.constant dense<0.000000e+00> : vector<8xf32>
    %112 = vector.multi_reduction <add>, %111, %cst_31 [1] : vector<8x512xf32> to vector<8xf32>
    %113 = vector.shape_cast %112 : vector<8xf32> to vector<8x1xf32>
    %cst_32 = arith.constant 0.001953125 : f32
    %114 = vector.broadcast %cst_32 : f32 to vector<8x1xf32>
    %115 = arith.mulf %113, %114 : vector<8x1xf32>
    %116 = vector.broadcast %115 : vector<8x1xf32> to vector<8x512xf32>
    %117 = arith.subf %111, %116 : vector<8x512xf32>
    %118 = arith.mulf %117, %117 : vector<8x512xf32>
    %cst_33 = arith.constant dense<0.000000e+00> : vector<8xf32>
    %119 = vector.multi_reduction <add>, %118, %cst_33 [1] : vector<8x512xf32> to vector<8xf32>
    %120 = vector.shape_cast %119 : vector<8xf32> to vector<8x1xf32>
    %cst_34 = arith.constant 0.001953125 : f32
    %121 = vector.broadcast %cst_34 : f32 to vector<8x1xf32>
    %122 = arith.mulf %120, %121 : vector<8x1xf32>
    %c0_35 = arith.constant 0 : index
    %c0_36 = arith.constant 0 : index
    %123 = vector.load %arg3[%c0_35, %c0_36] : memref<8x1xf32, #tpu.memory_space<vmem>>, vector<8x1xf32>
    %cst_37 = arith.constant 9.99999974E-6 : f32
    %124 = vector.broadcast %cst_37 : f32 to vector<8x1xf32>
    %125 = arith.addf %122, %124 : vector<8x1xf32>
    %126 = math.rsqrt %125 : vector<8x1xf32>
    %127 = arith.mulf %123, %126 : vector<8x1xf32>
    %128 = vector.broadcast %127 : vector<8x1xf32> to vector<8x512xf32>
    %129 = arith.mulf %117, %128 : vector<8x512xf32>
    %c0_38 = arith.constant 0 : index
    %c0_39 = arith.constant 0 : index
    %130 = vector.load %arg4[%c0_38, %c0_39] : memref<8x1xf32, #tpu.memory_space<vmem>>, vector<8x1xf32>
    %131 = vector.broadcast %130 : vector<8x1xf32> to vector<8x512xf32>
    %132 = arith.addf %129, %131 : vector<8x512xf32>
    %cst_40 = arith.constant 0.000000e+00 : f32
    %133 = vector.broadcast %cst_40 : f32 to vector<8x512xf32>
    %134 = arith.maximumf %132, %133 : vector<8x512xf32>
    %135 = arith.truncf %134 : vector<8x512xf32> to vector<8x512xbf16>
    %136 = vector.extract_strided_slice %135 {offsets = [0, 495], sizes = [8, 17], strides = [1, 1]} : vector<8x512xbf16> to vector<8x17xbf16>
    %137 = vector.extract_strided_slice %135 {offsets = [0, 0], sizes = [8, 495], strides = [1, 1]} : vector<8x512xbf16> to vector<8x495xbf16>
    %138 = tpu.concatenate %136, %137 in 1 : vector<8x17xbf16>, vector<8x495xbf16> -> vector<8x512xbf16>
    %139 = vector.extract_strided_slice %0 {offsets = [0, 0], sizes = [1, 512], strides = [1, 1]} : vector<9x512xbf16> to vector<1x512xbf16>
    %140 = vector.shape_cast %139 : vector<1x512xbf16> to vector<512xbf16>
    %141 = vector.shape_cast %140 : vector<512xbf16> to vector<1x512xbf16>
    %142 = vector.broadcast %141 : vector<1x512xbf16> to vector<8x512xbf16>
    %143 = arith.mulf %138, %142 : vector<8x512xbf16>
    %c0_41 = arith.constant 0 : index
    %c0_42 = arith.constant 0 : index
    %c0_43 = arith.constant 0 : index
    %144 = vector.load %arg5[%c0_41, %c0_42, %c0_43] : memref<9x8x8xbf16, #tpu.memory_space<vmem>>, vector<1x8x8xbf16>
    %145 = vector.shape_cast %144 : vector<1x8x8xbf16> to vector<8x8xbf16>
    %cst_44 = arith.constant dense<0.000000e+00> : vector<8x512xf32>
    %146 = tpu.matmul %145, %143, %cst_44 {dimension_numbers = #tpu.dot_dimension_numbers<[1], [0], [0], [1], [0, 0, 1, 1], [], []>} : vector<8x8xbf16>, vector<8x512xbf16>, vector<8x512xf32> -> vector<8x512xf32>
    %147 = vector.extract_strided_slice %135 {offsets = [0, 496], sizes = [8, 16], strides = [1, 1]} : vector<8x512xbf16> to vector<8x16xbf16>
    %148 = vector.extract_strided_slice %135 {offsets = [0, 0], sizes = [8, 496], strides = [1, 1]} : vector<8x512xbf16> to vector<8x496xbf16>
    %149 = tpu.concatenate %147, %148 in 1 : vector<8x16xbf16>, vector<8x496xbf16> -> vector<8x512xbf16>
    %150 = vector.extract_strided_slice %0 {offsets = [1, 0], sizes = [1, 512], strides = [1, 1]} : vector<9x512xbf16> to vector<1x512xbf16>
    %151 = vector.shape_cast %150 : vector<1x512xbf16> to vector<512xbf16>
    %152 = vector.shape_cast %151 : vector<512xbf16> to vector<1x512xbf16>
    %153 = vector.broadcast %152 : vector<1x512xbf16> to vector<8x512xbf16>
    %154 = arith.mulf %149, %153 : vector<8x512xbf16>
    %c1_45 = arith.constant 1 : index
    %c0_46 = arith.constant 0 : index
    %c0_47 = arith.constant 0 : index
    %155 = vector.load %arg5[%c1_45, %c0_46, %c0_47] : memref<9x8x8xbf16, #tpu.memory_space<vmem>>, vector<1x8x8xbf16>
    %156 = vector.shape_cast %155 : vector<1x8x8xbf16> to vector<8x8xbf16>
    %cst_48 = arith.constant dense<0.000000e+00> : vector<8x512xf32>
    %157 = tpu.matmul %156, %154, %cst_48 {dimension_numbers = #tpu.dot_dimension_numbers<[1], [0], [0], [1], [0, 0, 1, 1], [], []>} : vector<8x8xbf16>, vector<8x512xbf16>, vector<8x512xf32> -> vector<8x512xf32>
    %158 = arith.addf %146, %157 : vector<8x512xf32>
    %159 = vector.extract_strided_slice %135 {offsets = [0, 497], sizes = [8, 15], strides = [1, 1]} : vector<8x512xbf16> to vector<8x15xbf16>
    %160 = vector.extract_strided_slice %135 {offsets = [0, 0], sizes = [8, 497], strides = [1, 1]} : vector<8x512xbf16> to vector<8x497xbf16>
    %161 = tpu.concatenate %159, %160 in 1 : vector<8x15xbf16>, vector<8x497xbf16> -> vector<8x512xbf16>
    %162 = vector.extract_strided_slice %0 {offsets = [2, 0], sizes = [1, 512], strides = [1, 1]} : vector<9x512xbf16> to vector<1x512xbf16>
    %163 = vector.shape_cast %162 : vector<1x512xbf16> to vector<512xbf16>
    %164 = vector.shape_cast %163 : vector<512xbf16> to vector<1x512xbf16>
    %165 = vector.broadcast %164 : vector<1x512xbf16> to vector<8x512xbf16>
    %166 = arith.mulf %161, %165 : vector<8x512xbf16>
    %c2_49 = arith.constant 2 : index
    %c0_50 = arith.constant 0 : index
    %c0_51 = arith.constant 0 : index
    %167 = vector.load %arg5[%c2_49, %c0_50, %c0_51] : memref<9x8x8xbf16, #tpu.memory_space<vmem>>, vector<1x8x8xbf16>
    %168 = vector.shape_cast %167 : vector<1x8x8xbf16> to vector<8x8xbf16>
    %cst_52 = arith.constant dense<0.000000e+00> : vector<8x512xf32>
    %169 = tpu.matmul %168, %166, %cst_52 {dimension_numbers = #tpu.dot_dimension_numbers<[1], [0], [0], [1], [0, 0, 1, 1], [], []>} : vector<8x8xbf16>, vector<8x512xbf16>, vector<8x512xf32> -> vector<8x512xf32>
    %170 = arith.addf %158, %169 : vector<8x512xf32>
    %171 = vector.extract_strided_slice %135 {offsets = [0, 511], sizes = [8, 1], strides = [1, 1]} : vector<8x512xbf16> to vector<8x1xbf16>
    %172 = vector.extract_strided_slice %135 {offsets = [0, 0], sizes = [8, 511], strides = [1, 1]} : vector<8x512xbf16> to vector<8x511xbf16>
    %173 = tpu.concatenate %171, %172 in 1 : vector<8x1xbf16>, vector<8x511xbf16> -> vector<8x512xbf16>
    %174 = vector.extract_strided_slice %0 {offsets = [3, 0], sizes = [1, 512], strides = [1, 1]} : vector<9x512xbf16> to vector<1x512xbf16>
    %175 = vector.shape_cast %174 : vector<1x512xbf16> to vector<512xbf16>
    %176 = vector.shape_cast %175 : vector<512xbf16> to vector<1x512xbf16>
    %177 = vector.broadcast %176 : vector<1x512xbf16> to vector<8x512xbf16>
    %178 = arith.mulf %173, %177 : vector<8x512xbf16>
    %c3_53 = arith.constant 3 : index
    %c0_54 = arith.constant 0 : index
    %c0_55 = arith.constant 0 : index
    %179 = vector.load %arg5[%c3_53, %c0_54, %c0_55] : memref<9x8x8xbf16, #tpu.memory_space<vmem>>, vector<1x8x8xbf16>
    %180 = vector.shape_cast %179 : vector<1x8x8xbf16> to vector<8x8xbf16>
    %cst_56 = arith.constant dense<0.000000e+00> : vector<8x512xf32>
    %181 = tpu.matmul %180, %178, %cst_56 {dimension_numbers = #tpu.dot_dimension_numbers<[1], [0], [0], [1], [0, 0, 1, 1], [], []>} : vector<8x8xbf16>, vector<8x512xbf16>, vector<8x512xf32> -> vector<8x512xf32>
    %182 = arith.addf %170, %181 : vector<8x512xf32>
    %183 = vector.extract_strided_slice %0 {offsets = [4, 0], sizes = [1, 512], strides = [1, 1]} : vector<9x512xbf16> to vector<1x512xbf16>
    %184 = vector.shape_cast %183 : vector<1x512xbf16> to vector<512xbf16>
    %185 = vector.shape_cast %184 : vector<512xbf16> to vector<1x512xbf16>
    %186 = vector.broadcast %185 : vector<1x512xbf16> to vector<8x512xbf16>
    %187 = arith.mulf %135, %186 : vector<8x512xbf16>
    %c4_57 = arith.constant 4 : index
    %c0_58 = arith.constant 0 : index
    %c0_59 = arith.constant 0 : index
    %188 = vector.load %arg5[%c4_57, %c0_58, %c0_59] : memref<9x8x8xbf16, #tpu.memory_space<vmem>>, vector<1x8x8xbf16>
    %189 = vector.shape_cast %188 : vector<1x8x8xbf16> to vector<8x8xbf16>
    %cst_60 = arith.constant dense<0.000000e+00> : vector<8x512xf32>
    %190 = tpu.matmul %189, %187, %cst_60 {dimension_numbers = #tpu.dot_dimension_numbers<[1], [0], [0], [1], [0, 0, 1, 1], [], []>} : vector<8x8xbf16>, vector<8x512xbf16>, vector<8x512xf32> -> vector<8x512xf32>
    %191 = arith.addf %182, %190 : vector<8x512xf32>
    %192 = vector.extract_strided_slice %135 {offsets = [0, 1], sizes = [8, 511], strides = [1, 1]} : vector<8x512xbf16> to vector<8x511xbf16>
    %193 = vector.extract_strided_slice %135 {offsets = [0, 0], sizes = [8, 1], strides = [1, 1]} : vector<8x512xbf16> to vector<8x1xbf16>
    %194 = tpu.concatenate %192, %193 in 1 : vector<8x511xbf16>, vector<8x1xbf16> -> vector<8x512xbf16>
    %195 = vector.extract_strided_slice %0 {offsets = [5, 0], sizes = [1, 512], strides = [1, 1]} : vector<9x512xbf16> to vector<1x512xbf16>
    %196 = vector.shape_cast %195 : vector<1x512xbf16> to vector<512xbf16>
    %197 = vector.shape_cast %196 : vector<512xbf16> to vector<1x512xbf16>
    %198 = vector.broadcast %197 : vector<1x512xbf16> to vector<8x512xbf16>
    %199 = arith.mulf %194, %198 : vector<8x512xbf16>
    %c5_61 = arith.constant 5 : index
    %c0_62 = arith.constant 0 : index
    %c0_63 = arith.constant 0 : index
    %200 = vector.load %arg5[%c5_61, %c0_62, %c0_63] : memref<9x8x8xbf16, #tpu.memory_space<vmem>>, vector<1x8x8xbf16>
    %201 = vector.shape_cast %200 : vector<1x8x8xbf16> to vector<8x8xbf16>
    %cst_64 = arith.constant dense<0.000000e+00> : vector<8x512xf32>
    %202 = tpu.matmul %201, %199, %cst_64 {dimension_numbers = #tpu.dot_dimension_numbers<[1], [0], [0], [1], [0, 0, 1, 1], [], []>} : vector<8x8xbf16>, vector<8x512xbf16>, vector<8x512xf32> -> vector<8x512xf32>
    %203 = arith.addf %191, %202 : vector<8x512xf32>
    %204 = vector.extract_strided_slice %135 {offsets = [0, 15], sizes = [8, 497], strides = [1, 1]} : vector<8x512xbf16> to vector<8x497xbf16>
    %205 = vector.extract_strided_slice %135 {offsets = [0, 0], sizes = [8, 15], strides = [1, 1]} : vector<8x512xbf16> to vector<8x15xbf16>
    %206 = tpu.concatenate %204, %205 in 1 : vector<8x497xbf16>, vector<8x15xbf16> -> vector<8x512xbf16>
    %207 = vector.extract_strided_slice %0 {offsets = [6, 0], sizes = [1, 512], strides = [1, 1]} : vector<9x512xbf16> to vector<1x512xbf16>
    %208 = vector.shape_cast %207 : vector<1x512xbf16> to vector<512xbf16>
    %209 = vector.shape_cast %208 : vector<512xbf16> to vector<1x512xbf16>
    %210 = vector.broadcast %209 : vector<1x512xbf16> to vector<8x512xbf16>
    %211 = arith.mulf %206, %210 : vector<8x512xbf16>
    %c6_65 = arith.constant 6 : index
    %c0_66 = arith.constant 0 : index
    %c0_67 = arith.constant 0 : index
    %212 = vector.load %arg5[%c6_65, %c0_66, %c0_67] : memref<9x8x8xbf16, #tpu.memory_space<vmem>>, vector<1x8x8xbf16>
    %213 = vector.shape_cast %212 : vector<1x8x8xbf16> to vector<8x8xbf16>
    %cst_68 = arith.constant dense<0.000000e+00> : vector<8x512xf32>
    %214 = tpu.matmul %213, %211, %cst_68 {dimension_numbers = #tpu.dot_dimension_numbers<[1], [0], [0], [1], [0, 0, 1, 1], [], []>} : vector<8x8xbf16>, vector<8x512xbf16>, vector<8x512xf32> -> vector<8x512xf32>
    %215 = arith.addf %203, %214 : vector<8x512xf32>
    %216 = vector.extract_strided_slice %135 {offsets = [0, 16], sizes = [8, 496], strides = [1, 1]} : vector<8x512xbf16> to vector<8x496xbf16>
    %217 = vector.extract_strided_slice %135 {offsets = [0, 0], sizes = [8, 16], strides = [1, 1]} : vector<8x512xbf16> to vector<8x16xbf16>
    %218 = tpu.concatenate %216, %217 in 1 : vector<8x496xbf16>, vector<8x16xbf16> -> vector<8x512xbf16>
    %219 = vector.extract_strided_slice %0 {offsets = [7, 0], sizes = [1, 512], strides = [1, 1]} : vector<9x512xbf16> to vector<1x512xbf16>
    %220 = vector.shape_cast %219 : vector<1x512xbf16> to vector<512xbf16>
    %221 = vector.shape_cast %220 : vector<512xbf16> to vector<1x512xbf16>
    %222 = vector.broadcast %221 : vector<1x512xbf16> to vector<8x512xbf16>
    %223 = arith.mulf %218, %222 : vector<8x512xbf16>
    %c7_69 = arith.constant 7 : index
    %c0_70 = arith.constant 0 : index
    %c0_71 = arith.constant 0 : index
    %224 = vector.load %arg5[%c7_69, %c0_70, %c0_71] : memref<9x8x8xbf16, #tpu.memory_space<vmem>>, vector<1x8x8xbf16>
    %225 = vector.shape_cast %224 : vector<1x8x8xbf16> to vector<8x8xbf16>
    %cst_72 = arith.constant dense<0.000000e+00> : vector<8x512xf32>
    %226 = tpu.matmul %225, %223, %cst_72 {dimension_numbers = #tpu.dot_dimension_numbers<[1], [0], [0], [1], [0, 0, 1, 1], [], []>} : vector<8x8xbf16>, vector<8x512xbf16>, vector<8x512xf32> -> vector<8x512xf32>
    %227 = arith.addf %215, %226 : vector<8x512xf32>
    %228 = vector.extract_strided_slice %135 {offsets = [0, 17], sizes = [8, 495], strides = [1, 1]} : vector<8x512xbf16> to vector<8x495xbf16>
    %229 = vector.extract_strided_slice %135 {offsets = [0, 0], sizes = [8, 17], strides = [1, 1]} : vector<8x512xbf16> to vector<8x17xbf16>
    %230 = tpu.concatenate %228, %229 in 1 : vector<8x495xbf16>, vector<8x17xbf16> -> vector<8x512xbf16>
    %231 = vector.extract_strided_slice %0 {offsets = [8, 0], sizes = [1, 512], strides = [1, 1]} : vector<9x512xbf16> to vector<1x512xbf16>
    %232 = vector.shape_cast %231 : vector<1x512xbf16> to vector<512xbf16>
    %233 = vector.shape_cast %232 : vector<512xbf16> to vector<1x512xbf16>
    %234 = vector.broadcast %233 : vector<1x512xbf16> to vector<8x512xbf16>
    %235 = arith.mulf %230, %234 : vector<8x512xbf16>
    %c8_73 = arith.constant 8 : index
    %c0_74 = arith.constant 0 : index
    %c0_75 = arith.constant 0 : index
    %236 = vector.load %arg5[%c8_73, %c0_74, %c0_75] : memref<9x8x8xbf16, #tpu.memory_space<vmem>>, vector<1x8x8xbf16>
    %237 = vector.shape_cast %236 : vector<1x8x8xbf16> to vector<8x8xbf16>
    %cst_76 = arith.constant dense<0.000000e+00> : vector<8x512xf32>
    %238 = tpu.matmul %237, %235, %cst_76 {dimension_numbers = #tpu.dot_dimension_numbers<[1], [0], [0], [1], [0, 0, 1, 1], [], []>} : vector<8x8xbf16>, vector<8x512xbf16>, vector<8x512xf32> -> vector<8x512xf32>
    %239 = arith.addf %227, %238 : vector<8x512xf32>
    %cst_77 = arith.constant dense<0.000000e+00> : vector<8xf32>
    %240 = vector.multi_reduction <add>, %239, %cst_77 [1] : vector<8x512xf32> to vector<8xf32>
    %241 = vector.shape_cast %240 : vector<8xf32> to vector<8x1xf32>
    %cst_78 = arith.constant 0.001953125 : f32
    %242 = vector.broadcast %cst_78 : f32 to vector<8x1xf32>
    %243 = arith.mulf %241, %242 : vector<8x1xf32>
    %244 = vector.broadcast %243 : vector<8x1xf32> to vector<8x512xf32>
    %245 = arith.subf %239, %244 : vector<8x512xf32>
    %246 = arith.mulf %245, %245 : vector<8x512xf32>
    %cst_79 = arith.constant dense<0.000000e+00> : vector<8xf32>
    %247 = vector.multi_reduction <add>, %246, %cst_79 [1] : vector<8x512xf32> to vector<8xf32>
    %248 = vector.shape_cast %247 : vector<8xf32> to vector<8x1xf32>
    %cst_80 = arith.constant 0.001953125 : f32
    %249 = vector.broadcast %cst_80 : f32 to vector<8x1xf32>
    %250 = arith.mulf %248, %249 : vector<8x1xf32>
    %c0_81 = arith.constant 0 : index
    %c0_82 = arith.constant 0 : index
    %251 = vector.load %arg6[%c0_81, %c0_82] : memref<8x1xf32, #tpu.memory_space<vmem>>, vector<8x1xf32>
    %cst_83 = arith.constant 9.99999974E-6 : f32
    %252 = vector.broadcast %cst_83 : f32 to vector<8x1xf32>
    %253 = arith.addf %250, %252 : vector<8x1xf32>
    %254 = math.rsqrt %253 : vector<8x1xf32>
    %255 = arith.mulf %251, %254 : vector<8x1xf32>
    %256 = vector.broadcast %255 : vector<8x1xf32> to vector<8x512xf32>
    %257 = arith.mulf %245, %256 : vector<8x512xf32>
    %c0_84 = arith.constant 0 : index
    %c0_85 = arith.constant 0 : index
    %258 = vector.load %arg7[%c0_84, %c0_85] : memref<8x1xf32, #tpu.memory_space<vmem>>, vector<8x1xf32>
    %259 = vector.broadcast %258 : vector<8x1xf32> to vector<8x512xf32>
    %260 = arith.addf %257, %259 : vector<8x512xf32>
    %cst_86 = arith.constant 0.000000e+00 : f32
    %261 = vector.broadcast %cst_86 : f32 to vector<8x512xf32>
    %262 = arith.maximumf %260, %261 : vector<8x512xf32>
    %263 = vector.extract_strided_slice %262 {offsets = [0, 0], sizes = [8, 256], strides = [1, 1]} : vector<8x512xf32> to vector<8x256xf32>
    %c0_87 = arith.constant 0 : index
    %c0_88 = arith.constant 0 : index
    %c0_89 = arith.constant 0 : index
    %264 = vector.load %arg8[%c0_87, %c0_88, %c0_89] : memref<2x8x256xf32, #tpu.memory_space<vmem>>, vector<1x8x256xf32>
    %265 = vector.shape_cast %264 : vector<1x8x256xf32> to vector<8x256xf32>
    %266 = vector.shape_cast %263 : vector<8x256xf32> to vector<1x8x256xf32>
    tpu.vector_store %arg8[%c0_87, %c0_88, %c0_89], %266 {strides = array<i32>} : memref<2x8x256xf32, #tpu.memory_space<vmem>>, vector<1x8x256xf32>,
    %267 = vector.extract_strided_slice %262 {offsets = [0, 256], sizes = [8, 256], strides = [1, 1]} : vector<8x512xf32> to vector<8x256xf32>
    %c1_90 = arith.constant 1 : index
    %c0_91 = arith.constant 0 : index
    %c0_92 = arith.constant 0 : index
    %268 = vector.load %arg8[%c1_90, %c0_91, %c0_92] : memref<2x8x256xf32, #tpu.memory_space<vmem>>, vector<1x8x256xf32>
    %269 = vector.shape_cast %268 : vector<1x8x256xf32> to vector<8x256xf32>
    %270 = vector.shape_cast %267 : vector<8x256xf32> to vector<1x8x256xf32>
    tpu.vector_store %arg8[%c1_90, %c0_91, %c0_92], %270 {strides = array<i32>} : memref<2x8x256xf32, #tpu.memory_space<vmem>>, vector<1x8x256xf32>,
    return
  }
}

</mosaic_0001>

<bundles_post_ra>
// kernel: tpu_custom_call.1
= control target key start
LH: loop header
LB: loop body
LE: loop exit
PB: predicated region body
PF: predicated region fallthrough
CT: control target
= control target key end

     0   :  { %s3592_s0 = inlined_call_operand.vmem [shape: f32[2,4,256], index: 0, kind: input, shape index: {}]   ;;  %s3593_s1 = inlined_call_operand.vmem [shape: bf16[9,512], index: 1, kind: input, shape index: {}]   ;;  %s3594_s2 = inlined_call_operand.vmem [shape: bf16[9,8,4], index: 2, kind: input, shape index: {}]   ;;  %s3595_s3 = inlined_call_operand.vmem [shape: f32[8,1], index: 3, kind: input, shape index: {}]   ;;  %s3596_s4 = inlined_call_operand.vmem [shape: f32[8,1], index: 4, kind: input, shape index: {}]   ;;  %s3597_s5 = inlined_call_operand.vmem [shape: bf16[9,8,8], index: 5, kind: input, shape index: {}]   ;;  %s3598_s6 = inlined_call_operand.vmem [shape: f32[8,1], index: 6, kind: input, shape index: {}]   ;;  %s3599_s7 = inlined_call_operand.vmem [shape: f32[8,1], index: 7, kind: input, shape index: {}]   ;;  %s3600_s8 = inlined_call_operand.hbm [shape: f32[2,8,256], index: 8, kind: output, shape index: {}]  }
   0x1   :  { %v36_v0 = vld [vmem:[%s3592_s0 + $0x8] sm:$0xff]  ;;  %v35_v1 = vld [vmem:[%s3592_s0] sm:$0xff] }
   0x2   :  { %v40_v2 = vcombine.high %v36_v0, %v36_v0  ;;  %v39_v3 = vcombine.high %v35_v1, %v35_v1 }
   0x3   :  { %13 = vsyncpa [#allocation3], 0  ;;  %s2865_s9 = smov 16   ;;  %v2935_v6 = vpack.c.bf16 %v35_v1, %v35_v1  ;;  %v2937_v7 = vpack.c.bf16 %v36_v0, %v36_v0  ;;  %v2866_v8 = vmov 0   ;;  %s2867_s0 = smov 17   ;;  %v31_v9 = vld [vmem:[%s3593_s1] sm:$0xff]  ;;  %v84_v11 = vlaneseq }
   0x4   :  { %v2927_v4 = vpack.c.bf16 %v40_v2, %v40_v2  ;;  %v2929_v5 = vpack.c.bf16 %v39_v3, %v39_v3  ;;  %217 = vmatprep.mubr.bf16.mxu0 %v2866_v8  ;;  %258 = vmatprep.mubr.bf16.mxu1 %v2866_v8  ;;  %s2868_s10 = smov 15   ;;  %s2869_s11 = smov 1   ;;  %v32_v10 = vld [vmem:[%s3593_s1 + $0x8] sm:$0xff]  ;;  %v2590_v12 = vcombine.low %v31_v9, %v31_v9  ;;  %vm122_vm0 = vcmask 130048   ;;  %v2594_v52 = vld [vmem:[%s3594_s2 + $0x4] sm:$0xf] }
   0x5   :  { %2825 = vset.pattern.permute.xlu0 %v2866_v8  ;;  %2826 = vset.pattern.permute.xlu1 %v2866_v8  ;;  %s2870_s12 = smov 127   ;;  %s2871_s13 = smov 113   ;;  %v2591_v13 = vcombine.high %v31_v9, %v31_v9  ;;  %v2593_v14 = vcombine.high %v32_v10, %v32_v10  ;;  %v2592_v15 = vcombine.low %v32_v10, %v32_v10  ;;  %v3009_v16 = vshrl.u32 %v84_v11, 7 }
   0x6   :  { %114 = vrot.lane.b32.xlu0 %v2927_v4, %s2865_s9  ;;  %118 = vrot.lane.b32.xlu1 %v2929_v5, %s2865_s9  ;;  %s2872_s14 = smov 112   ;;  %s2873_s15 = smov 111   ;;  %v134_v19 = vshrl.u32 %v2590_v12, 16  ;;  %v3022_v28 = vpack.i.b16 %v2590_v12, %v2590_v12  ;;  %vm59_vm1 = vcmask 138240   ;;  %vm172_vm2 = vcmask 1041408  }
   0x7   :  { %v141_v17 = vshrl.u32 %v2591_v13, 16  ;;  %v155_v18 = vshrl.u32 %v2593_v14, 16  ;;  %v148_v20 = vshrl.u32 %v2592_v15, 16  ;;  %v3012_v21 = vsub.s32 0, %v3009_v16  ;;  %s2874_s25 = smov [#allocation2]  }
   0x8   :  { %v3018_v24 = vpack.i.b16 %v134_v19, %v134_v19  ;;  %v3044_v36 = vpack.i.b16 %v2591_v13, %v2591_v13  ;;  %v3046_v37 = vpack.i.b16 %v2592_v15, %v2592_v15  ;;  %v3048_v38 = vpack.i.b16 %v2593_v14, %v2593_v14 }
   0x9   :  { %v3014_v22 = vpack.i.b16 %v141_v17, %v141_v17  ;;  %v3016_v23 = vpack.i.b16 %v155_v18, %v155_v18  ;;  %v3020_v25 = vpack.i.b16 %v148_v20, %v148_v20  ;;  %v3042_v35 = vrot.slane %v3022_v28, %v3012_v21 }
   0xa   :  { %116 = vrot.lane.b32.xlu0 %v2935_v6, %s2865_s9  ;;  %120 = vrot.lane.b32.xlu1 %v2937_v7, %s2865_s9  ;;  %v3034_v31 = vrot.slane %v3018_v24, %v3012_v21  ;;  %vm168_vm3 = vcmask 31744   ;;  %v3069_v54 = vrot.slane %v3044_v36, %v3012_v21  ;;  %v3073_v55 = vrot.slane %v3046_v37, %v3012_v21 }
   0xb   :  { %v3026_v29 = vrot.slane %v3014_v22, %v3012_v21  ;;  %v3030_v30 = vrot.slane %v3016_v23, %v3012_v21  ;;  %v3038_v32 = vrot.slane %v3020_v25, %v3012_v21  ;;  %v3077_v56 = vrot.slane %v3048_v38, %v3012_v21 }
   0xc   :  { %v386_v57 = vsub.s32 1, %v3009_v16  ;;  %vm372_vm4 = vcmask 121856   ;;  %vm515_vm5 = vcmask 7168   ;;  %vm781_vm6 = vcmask 1039360  }
   0xd   :  { %vm924_vm7 = vcmask 924672   ;;  %vm1067_vm8 = vcmask 916480   ;;  %vm1210_vm9 = vcmask 908288   ;;  %vm1473_vm10 = vcmask 1043456  }
   0xe   :  { %48 = vrot.lane.b32.xlu0 %v2927_v4, %s2867_s0  ;;  %53 = vrot.lane.b32.xlu1 %v2935_v6, %s2867_s0  ;;  %v3092_v3 = vrot.slane %v3022_v28, %v386_v57  ;;  %v3099_v13 = vrot.slane %v3044_v36, %v386_v57  ;;  %v3102_v14 = vrot.slane %v3046_v37, %v386_v57  ;;  %vm1469_vm11 = vcmask 64512  }
   0xf   :  { %v3105_v15 = vrot.slane %v3048_v38, %v386_v57 }
  0x12   :  { %55 = vrot.lane.b32.xlu0 %v2929_v5, %s2867_s0  ;;  %57 = vrot.lane.b32.xlu1 %v2937_v7, %s2867_s0 }
  0x16   :  { %364 = vrot.lane.b32.xlu0 %v2927_v4, %s2868_s10  ;;  %366 = vrot.lane.b32.xlu1 %v2935_v6, %s2868_s10 }
  0x1a   :  { %368 = vrot.lane.b32.xlu0 %v2929_v5, %s2868_s10  ;;  %370 = vrot.lane.b32.xlu1 %v2937_v7, %s2868_s10 }
  0x1e   :  { %507 = vrot.lane.b32.xlu0 %v2927_v4, %s2869_s11  ;;  %509 = vrot.lane.b32.xlu1 %v2935_v6, %s2869_s11 }
  0x22   :  { %511 = vrot.lane.b32.xlu0 %v2929_v5, %s2869_s11  ;;  %513 = vrot.lane.b32.xlu1 %v2937_v7, %s2869_s11 }
  0x26   :  { %773 = vrot.lane.b32.xlu0 %v2935_v6, %s2870_s12  ;;  %775 = vrot.lane.b32.xlu1 %v2929_v5, %s2870_s12 }
  0x2a   :  { %777 = vrot.lane.b32.xlu0 %v2937_v7, %s2870_s12  ;;  %779 = vrot.lane.b32.xlu1 %v2927_v4, %s2870_s12 }
  0x2e   :  { %916 = vrot.lane.b32.xlu0 %v2935_v6, %s2871_s13  ;;  %918 = vrot.lane.b32.xlu1 %v2929_v5, %s2871_s13 }
  0x32   :  { %920 = vrot.lane.b32.xlu0 %v2937_v7, %s2871_s13  ;;  %922 = vrot.lane.b32.xlu1 %v2927_v4, %s2871_s13 }
  0x36   :  { %1059 = vrot.lane.b32.xlu0 %v2935_v6, %s2872_s14  ;;  %1061 = vrot.lane.b32.xlu1 %v2929_v5, %s2872_s14 }
  0x3a   :  { %1063 = vrot.lane.b32.xlu0 %v2937_v7, %s2872_s14  ;;  %1065 = vrot.lane.b32.xlu1 %v2927_v4, %s2872_s14 }
  0x3e   :  { %1202 = vrot.lane.b32.xlu0 %v2935_v6, %s2873_s15  ;;  %1204 = vrot.lane.b32.xlu1 %v2929_v5, %s2873_s15 }
  0x42   :  { %1206 = vrot.lane.b32.xlu0 %v2937_v7, %s2873_s15  ;;  %1208 = vrot.lane.b32.xlu1 %v2927_v4, %s2873_s15 }
  0x78   :  { %v115_v26 = vpop.permute.xlu0 %114  ;;  %v119_v27 = vpop.permute.xlu1 %118 }
  0x7c   :  { %v117_v33 = vpop.permute.xlu0 %116  ;;  %v121_v34 = vpop.permute.xlu1 %120 }
  0x7d   :  { %v123_v39 = vsel %vm122_vm0, %v117_v33, %v119_v27  ;;  %v132_v40 = vsel %vm122_vm0, %v115_v26, %v117_v33  ;;  %v124_v41 = vsel %vm122_vm0, %v119_v27, %v121_v34  ;;  %v125_v42 = vsel %vm122_vm0, %v121_v34, %v115_v26  ;;  %v113_v33 = vld [vmem:[%s3594_s2] sm:$0xf] }
  0x7e   :  { %v163_v43 = vmul.bf16 %v3026_v29, %v123_v39  ;;  %v165_v44 = vmul.bf16 %v3030_v30, %v125_v42  ;;  %v162_v45 = vmul.bf16 %v3034_v31, %v132_v40  ;;  %v164_v46 = vmul.bf16 %v3038_v32, %v124_v41 }
  0x80   :  { %v49_v47 = vpop.permute.xlu0 %48  ;;  %v54_v48 = vpop.permute.xlu1 %53  ;;  %2595 = vmatprep.subr.msk.bf16.mxu0 %vm172_vm2, %v163_v43  ;;  %2597 = vmatprep.subr.msk.bf16.mxu1 %vm172_vm2, %v165_v44  ;;  %v174_v49 = vsel %vm172_vm2, %v162_v45, 0  ;;  %v180_v50 = vsel %vm172_vm2, %v164_v46, 0  ;;  %v3124_v45 = vrot.slane %v3018_v24, %v386_v57  ;;  %v3127_v46 = vrot.slane %v3014_v22, %v386_v57 }
  0x81   :  { %v69_v51 = vsel %vm59_vm1, %v49_v47, %v54_v48  ;;  %186 = vmatpush1.bf16.msra.mxu0 %v174_v49  ;;  %227 = vmatpush1.bf16.msra.mxu1 %v180_v50  ;;  %v652_v50 = vsub.s32 2, %v3009_v16 }
  0x82   :  { %v109_v53 = vmul.bf16 %v3042_v35, %v69_v51 }
  0x84   :  { %v56_v58 = vpop.permute.xlu0 %55  ;;  %v58_v59 = vpop.permute.xlu1 %57  ;;  %2596 = vmatmul.mubr.msk.bf16.vlgmr.msra.gmra.mrb[0].mxu0 %vm168_vm3, %v2594_v52  ;;  %2598 = vmatmul.mubr.msk.bf16.vlgmr.msra.gmra.mrb[0].mxu1 %vm168_vm3, %v2594_v52  ;;  %v271_v2 = vsel %vm172_vm2, %v109_v53, 0 }
  0x85   :  { %v60_v60 = vsel %vm59_vm1, %v54_v48, %v56_v58  ;;  %v61_v61 = vsel %vm59_vm1, %v56_v58, %v58_v59  ;;  %v62_v62 = vsel %vm59_vm1, %v58_v59, %v49_v47  ;;  %314 = vmatprep.mubr.bf16.mxu0 %v2866_v8  ;;  %355 = vmatprep.mubr.bf16.mxu1 %v2866_v8 }
  0x86   :  { %v110_v63 = vmul.bf16 %v3069_v54, %v60_v60  ;;  %v111_v0 = vmul.bf16 %v3073_v55, %v61_v61  ;;  %v112_v1 = vmul.bf16 %v3077_v56, %v62_v62  ;;  %v3130_v47 = vrot.slane %v3020_v25, %v386_v57 }
  0x87   :  { %v3133_v48 = vrot.slane %v3016_v23, %v386_v57 }
  0x88   :  { %2599 = vmatprep.subr.msk.bf16.mxu0 %vm172_vm2, %v110_v63  ;;  %2601 = vmatprep.subr.msk.bf16.mxu1 %vm172_vm2, %v112_v1  ;;  %v365_v9 = vpop.permute.xlu0 %364  ;;  %v367_v10 = vpop.permute.xlu1 %366  ;;  %v277_v11 = vsel %vm172_vm2, %v111_v0, 0  ;;  %v3147_v63 = vrot.slane %v3044_v36, %v652_v50  ;;  %v3150_v0 = vrot.slane %v3048_v38, %v652_v50  ;;  %v2603_v1 = vld [vmem:[%s3594_s2 + $0x8] sm:$0xf] }
  0x89   :  { %283 = vmatpush1.bf16.msra.mxu0 %v271_v2  ;;  %v382_v12 = vsel %vm372_vm4, %v365_v9, %v367_v10  ;;  %324 = vmatpush1.bf16.msra.mxu1 %v277_v11 }
  0x8a   :  { %v400_v17 = vmul.bf16 %v3092_v3, %v382_v12  ;;  %v667_v12 = vmul.bf16 %v3147_v63, %v2929_v5 }
  0x8c   :  { %v369_v18 = vpop.permute.xlu0 %368  ;;  %v371_v19 = vpop.permute.xlu1 %370  ;;  %v410_v41 = vsel %vm172_vm2, %v400_v17, 0  ;;  %v669_v17 = vmul.bf16 %v3150_v0, %v2927_v4 }
  0x8d   :  { %v373_v20 = vsel %vm372_vm4, %v367_v10, %v369_v18  ;;  %v374_v26 = vsel %vm372_vm4, %v369_v18, %v371_v19  ;;  %v375_v27 = vsel %vm372_vm4, %v371_v19, %v365_v9  ;;  %v3168_v18 = vrot.slane %v3022_v28, %v652_v50 }
  0x8e   :  { %v401_v34 = vmul.bf16 %v3099_v13, %v373_v20  ;;  %v402_v39 = vmul.bf16 %v3102_v14, %v374_v26  ;;  %v403_v40 = vmul.bf16 %v3105_v15, %v375_v27  ;;  %v3171_v19 = vrot.slane %v3046_v37, %v652_v50 }
  0x8f   :  { %v666_v20 = vmul.bf16 %v3168_v18, %v2935_v6  ;;  %v3180_v27 = vrot.slane %v3014_v22, %v652_v50 }
  0x90   :  { %2600 = vmatmul.mubr.msk.bf16.vlgmr.msra.gmra.mrb[0].mxu0 %vm168_vm3, %v113_v33  ;;  %2602 = vmatmul.mubr.msk.bf16.vlgmr.msra.gmra.mrb[0].mxu1 %vm168_vm3, %v113_v33  ;;  %v508_v42 = vpop.permute.xlu0 %507  ;;  %v510_v43 = vpop.permute.xlu1 %509  ;;  %v416_v44 = vsel %vm172_vm2, %v402_v39, 0  ;;  %v668_v26 = vmul.bf16 %v3171_v19, %v2937_v7  ;;  %v3183_v33 = vrot.slane %v3016_v23, %v652_v50 }
  0x91   :  { %2604 = vmatprep.subr.msk.bf16.mxu0 %vm172_vm2, %v401_v34  ;;  %2606 = vmatprep.subr.msk.bf16.mxu1 %vm172_vm2, %v403_v40  ;;  %v525_v49 = vsel %vm515_vm5, %v508_v42, %v510_v43  ;;  %v2608_v40 = vld [vmem:[%s3594_s2 + $0xc] sm:$0xf] }
  0x92   :  { %422 = vmatpush1.bf16.msra.mxu0 %v410_v41  ;;  %463 = vmatpush1.bf16.msra.mxu1 %v416_v44  ;;  %v543_v60 = vmul.bf16 %v3124_v45, %v525_v49  ;;  %v676_v41 = vsel %vm172_vm2, %v666_v20, 0  ;;  %v682_v6 = vsel %vm172_vm2, %v668_v26, 0  ;;  %v3197_v49 = vrot.slane %v3018_v24, %v652_v50 }
  0x93   :  { %453 = vmatprep.mubr.bf16.mxu0 %v2866_v8  ;;  %494 = vmatprep.mubr.bf16.mxu1 %v2866_v8 }
  0x94   :  { %v512_v51 = vpop.permute.xlu0 %511  ;;  %v514_v52 = vpop.permute.xlu1 %513  ;;  %v553_v2 = vsel %vm172_vm2, %v543_v60, 0 }
  0x95   :  { %v516_v53 = vsel %vm515_vm5, %v510_v43, %v512_v51  ;;  %v517_v58 = vsel %vm515_vm5, %v512_v51, %v514_v52  ;;  %v518_v59 = vsel %vm515_vm5, %v514_v52, %v508_v42  ;;  %v3202_v51 = vrot.slane %v3020_v25, %v652_v50 }
  0x96   :  { %v544_v57 = vmul.bf16 %v3127_v46, %v516_v53  ;;  %v545_v61 = vmul.bf16 %v3130_v47, %v517_v58  ;;  %v546_v62 = vmul.bf16 %v3133_v48, %v518_v59  ;;  %v938_v58 = vsub.s32 3, %v3009_v16  ;;  %v2613_v16 = vld [vmem:[%s3594_s2 + $0x10] sm:$0xf] }
  0x98   :  { %2609 = vmatprep.subr.msk.bf16.mxu0 %vm172_vm2, %v544_v57  ;;  %2611 = vmatprep.subr.msk.bf16.mxu1 %vm172_vm2, %v546_v62  ;;  %v559_v9 = vsel %vm172_vm2, %v545_v61, 0  ;;  %v774_v10 = vpop.permute.xlu0 %773  ;;  %v776_v11 = vpop.permute.xlu1 %775  ;;  %v3212_v50 = vrot.slane %v3044_v36, %v938_v58  ;;  %v3215_v62 = vrot.slane %v3048_v38, %v938_v58  ;;  %v3229_v38 = vrot.slane %v3022_v28, %v938_v58 }
  0x99   :  { %v782_v52 = vsel %vm781_vm6, %v774_v10, %v776_v11 }
  0x9a   :  { %v809_v57 = vmul.bf16 %v3197_v49, %v782_v52 }
  0x9c   :  { %2605 = vmatmul.mubr.msk.bf16.vlgmr.msra.gmra.mrb[0].mxu0 %vm168_vm3, %v2603_v1  ;;  %2607 = vmatmul.mubr.msk.bf16.vlgmr.msra.gmra.mrb[0].mxu1 %vm168_vm3, %v2603_v1  ;;  %v778_v4 = vpop.permute.xlu0 %777  ;;  %v780_v5 = vpop.permute.xlu1 %779 }
  0x9d   :  { %565 = vmatpush1.bf16.msra.mxu0 %v553_v2  ;;  %606 = vmatpush1.bf16.msra.mxu1 %v559_v9  ;;  %v783_v34 = vsel %vm781_vm6, %v776_v11, %v778_v4  ;;  %v791_v39 = vsel %vm781_vm6, %v780_v5, %v774_v10  ;;  %v784_v53 = vsel %vm781_vm6, %v778_v4, %v780_v5  ;;  %v819_v9 = vsel %vm172_vm2, %v809_v57, 0 }
  0x9e   :  { %596 = vmatprep.mubr.bf16.mxu0 %v2866_v8  ;;  %637 = vmatprep.mubr.bf16.mxu1 %v2866_v8  ;;  %v810_v7 = vmul.bf16 %v3180_v27, %v783_v34  ;;  %v812_v42 = vmul.bf16 %v3183_v33, %v791_v39  ;;  %v811_v61 = vmul.bf16 %v3202_v51, %v784_v53 }
  0x9f   :  { %2614 = vmatprep.subr.msk.bf16.mxu0 %vm172_vm2, %v667_v12  ;;  %2616 = vmatprep.subr.msk.bf16.mxu1 %vm172_vm2, %v669_v17  ;;  %v3234_v4 = vrot.slane %v3046_v37, %v938_v58  ;;  %v3246_v37 = vrot.slane %v3016_v23, %v938_v58 }
  0xa0   :  { %v917_v43 = vpop.permute.xlu0 %916  ;;  %v919_v44 = vpop.permute.xlu1 %918  ;;  %v825_v10 = vsel %vm172_vm2, %v811_v61, 0  ;;  %v3266_v61 = vrot.slane %v3018_v24, %v938_v58 }
  0xa1   :  { %v925_v5 = vsel %vm924_vm7, %v917_v43, %v919_v44 }
  0xa2   :  { %v952_v28 = vmul.bf16 %v3229_v38, %v925_v5 }
  0xa4   :  { %v921_v59 = vpop.permute.xlu0 %920  ;;  %v923_v60 = vpop.permute.xlu1 %922 }
  0xa5   :  { %v926_v1 = vsel %vm924_vm7, %v919_v44, %v921_v59  ;;  %v934_v2 = vsel %vm924_vm7, %v923_v60, %v917_v43  ;;  %v927_v20 = vsel %vm924_vm7, %v921_v59, %v923_v60  ;;  %v962_v43 = vsel %vm172_vm2, %v952_v28, 0 }
  0xa6   :  { %v953_v11 = vmul.bf16 %v3212_v50, %v926_v1  ;;  %v955_v36 = vmul.bf16 %v3215_v62, %v934_v2  ;;  %v954_v39 = vmul.bf16 %v3234_v4, %v927_v20  ;;  %v3271_v1 = vrot.slane %v3020_v25, %v938_v58 }
  0xa8   :  { %2610 = vmatmul.mubr.msk.bf16.vlgmr.msra.gmra.mrb[0].mxu0 %vm168_vm3, %v2608_v40  ;;  %2612 = vmatmul.mubr.msk.bf16.vlgmr.msra.gmra.mrb[0].mxu1 %vm168_vm3, %v2608_v40  ;;  %v1060_v12 = vpop.permute.xlu0 %1059  ;;  %v1062_v17 = vpop.permute.xlu1 %1061  ;;  %v3243_v40 = vrot.slane %v3014_v22, %v938_v58  ;;  %v2618_v22 = vld [vmem:[%s3594_s2 + $0x14] sm:$0xf]  ;;  %v968_v23 = vsel %vm172_vm2, %v954_v39, 0 }
  0xa9   :  { %688 = vmatpush1.bf16.msra.mxu0 %v676_v41  ;;  %729 = vmatpush1.bf16.msra.mxu1 %v682_v6  ;;  %v33_v41 = vld [vmem:[%s3593_s1 + $0x10] sm:$0x11] }
  0xaa   :  { %719 = vmatprep.mubr.bf16.mxu0 %v2866_v8  ;;  %760 = vmatprep.mubr.bf16.mxu1 %v2866_v8  ;;  %v2634_v44 = vcombine.high %v33_v41, %v33_v41  ;;  %v2633_v20 = vcombine.low %v33_v41, %v33_v41 }
  0xab   :  { %2619 = vmatprep.subr.msk.bf16.mxu0 %vm172_vm2, %v810_v7  ;;  %2621 = vmatprep.subr.msk.bf16.mxu1 %vm172_vm2, %v812_v42  ;;  %v34_v42 = vld [vmem:[%s3593_s1 + $0x18] sm:$0x11] }
  0xac   :  { %v1064_v26 = vpop.permute.xlu0 %1063  ;;  %v1066_v34 = vpop.permute.xlu1 %1065  ;;  %v2636_v57 = vcombine.high %v34_v42, %v34_v42  ;;  %v1240_v2 = vpack.i.b16 %v2634_v44, %v2634_v44  ;;  %v2635_v25 = vcombine.low %v34_v42, %v34_v42  ;;  %v1233_v39 = vpack.i.b16 %v2633_v20, %v2633_v20 }
  0xad   :  { %v1069_v6 = vsel %vm1067_vm8, %v1062_v17, %v1064_v26  ;;  %v1077_v7 = vsel %vm1067_vm8, %v1066_v34, %v1060_v12 }
  0xae   :  { %v1096_v52 = vmul.bf16 %v3243_v40, %v1069_v6  ;;  %v1098_v53 = vmul.bf16 %v3246_v37, %v1077_v7  ;;  %v3280_v58 = vrot.slane %v1240_v2, %v3012_v21  ;;  %v1247_v6 = vpack.i.b16 %v2635_v25, %v2635_v25 }
  0xb0   :  { %v1203_v59 = vpop.permute.xlu0 %1202  ;;  %v1205_v60 = vpop.permute.xlu1 %1204 }
  0xb4   :  { %2615 = vmatmul.mubr.msk.bf16.vlgmr.msra.gmra.mrb[0].mxu0 %vm168_vm3, %v2613_v16  ;;  %2617 = vmatmul.mubr.msk.bf16.vlgmr.msra.gmra.mrb[0].mxu1 %vm168_vm3, %v2613_v16  ;;  %v1068_v16 = vsel %vm1067_vm8, %v1060_v12, %v1062_v17  ;;  %v1207_v24 = vpop.permute.xlu0 %1206 }
  0xb5   :  { %831 = vmatpush1.bf16.msra.mxu0 %v819_v9  ;;  %872 = vmatpush1.bf16.msra.mxu1 %v825_v10  ;;  %v1070_v9 = vsel %vm1067_vm8, %v1064_v26, %v1066_v34  ;;  %v1254_v10 = vpack.i.b16 %v2636_v57, %v2636_v57  ;;  %v1212_v17 = vsel %vm1210_vm9, %v1205_v60, %v1207_v24  ;;  %v2623_v34 = vld [vmem:[%s3594_s2 + $0x18] sm:$0xf]  ;;  %v2628_v57 = vld [vmem:[%s3594_s2 + $0x1c] sm:$0xf] }
  0xb6   :  { %862 = vmatprep.mubr.bf16.mxu0 %v2866_v8  ;;  %903 = vmatprep.mubr.bf16.mxu1 %v2866_v8  ;;  %v1097_v5 = vmul.bf16 %v3271_v1, %v1070_v9  ;;  %v1261_v7 = vmul.bf16 %v3280_v58, %v1212_v17 }
  0xb7   :  { %2624 = vmatprep.subr.msk.bf16.mxu0 %vm172_vm2, %v953_v11  ;;  %2626 = vmatprep.subr.msk.bf16.mxu1 %vm172_vm2, %v955_v36  ;;  %v1209_v11 = vpop.permute.xlu1 %1208  ;;  %v1095_v36 = vmul.bf16 %v3266_v61, %v1068_v16  ;;  %v3283_v12 = vrot.slane %v1254_v10, %v3012_v21 }
  0xb8   :  { %v1220_v26 = vsel %vm1210_vm9, %v1209_v11, %v1203_v59  ;;  %v1111_v41 = vsel %vm172_vm2, %v1097_v5, 0  ;;  %v1213_v44 = vsel %vm1210_vm9, %v1207_v24, %v1209_v11 }
  0xb9   :  { %v1105_v28 = vsel %vm172_vm2, %v1095_v36, 0  ;;  %v1263_v42 = vmul.bf16 %v3283_v12, %v1220_v26 }
  0xc0   :  { %2620 = vmatmul.mubr.msk.bf16.vlgmr.msra.gmra.mrb[0].mxu0 %vm168_vm3, %v2618_v22  ;;  %2622 = vmatmul.mubr.msk.bf16.vlgmr.msra.gmra.mrb[0].mxu1 %vm168_vm3, %v2618_v22  ;;  %v3297_v22 = vrot.slane %v1233_v39, %v3012_v21 }
  0xc1   :  { %974 = vmatpush1.bf16.msra.mxu0 %v962_v43  ;;  %1015 = vmatpush1.bf16.msra.mxu1 %v968_v23  ;;  %v3302_v43 = vrot.slane %v1247_v6, %v3012_v21  ;;  %v1211_v23 = vsel %vm1210_vm9, %v1203_v59, %v1205_v60  ;;  %v2637_v59 = vld [vmem:[%s3594_s2 + $0x20] sm:$0xf] }
  0xc2   :  { %1005 = vmatprep.mubr.bf16.mxu0 %v2866_v8  ;;  %1046 = vmatprep.mubr.bf16.mxu1 %v2866_v8 }
  0xc3   :  { %2629 = vmatprep.subr.msk.bf16.mxu0 %vm172_vm2, %v1096_v52  ;;  %2631 = vmatprep.subr.msk.bf16.mxu1 %vm172_vm2, %v1098_v53  ;;  %v1260_v52 = vmul.bf16 %v3297_v22, %v1211_v23  ;;  %v1262_v53 = vmul.bf16 %v3302_v43, %v1213_v44 }
  0xc5   :  { %v1270_v2 = vsel %vm172_vm2, %v1260_v52, 0  ;;  %v1276_v21 = vsel %vm172_vm2, %v1262_v53, 0 }
  0xcc   :  { %2625 = vmatmul.mubr.msk.bf16.vlgmr.msra.gmra.mrb[0].mxu0 %vm168_vm3, %v2623_v34  ;;  %2627 = vmatmul.mubr.msk.bf16.vlgmr.msra.gmra.mrb[0].mxu1 %vm168_vm3, %v2623_v34 }
  0xcd   :  { %1117 = vmatpush1.bf16.msra.mxu0 %v1105_v28  ;;  %1158 = vmatpush1.bf16.msra.mxu1 %v1111_v41 }
  0xce   :  { %1148 = vmatprep.mubr.bf16.mxu0 %v2866_v8  ;;  %1189 = vmatprep.mubr.bf16.mxu1 %v2866_v8 }
  0xcf   :  { %2638 = vmatprep.subr.msk.bf16.mxu0 %vm172_vm2, %v1261_v7  ;;  %2640 = vmatprep.subr.msk.bf16.mxu1 %vm172_vm2, %v1263_v42 }
  0xd8   :  { %2630 = vmatmul.mubr.msk.bf16.vlgmr.msra.gmra.mrb[0].mxu0 %vm168_vm3, %v2628_v57  ;;  %2632 = vmatmul.mubr.msk.bf16.vlgmr.msra.gmra.mrb[0].mxu1 %vm168_vm3, %v2628_v57 }
  0xd9   :  { %1282 = vmatpush1.bf16.msra.mxu0 %v1270_v2  ;;  %1323 = vmatpush1.bf16.msra.mxu1 %v1276_v21  ;;  %v1400_v2 = vld [vmem:[%s3596_s4] sm:$0xff] }
  0xda   :  { %1313 = vmatprep.mubr.bf16.mxu0 %v2866_v8  ;;  %1354 = vmatprep.mubr.bf16.mxu1 %v2866_v8 }
  0xe4   :  { %2639 = vmatmul.mubr.msk.bf16.vlgmr.msra.gmra.mrb[0].mxu0 %vm168_vm3, %v2637_v59  ;;  %2641 = vmatmul.mubr.msk.bf16.vlgmr.msra.gmra.mrb[0].mxu1 %vm168_vm3, %v2637_v59 }
  0xe5   :  { %1518 = vmatprep.mubr.bf16.mxu0 %v2866_v8  ;;  %1559 = vmatprep.mubr.bf16.mxu1 %v2866_v8 }
 0x1b7   :  { %v1315_v60 = vpop.f32.mrb[0].mxu0  ;;  %v1356_v16 = vpop.f32.mrb[0].mxu1 }
 0x1b8   :  { %v1317_v9 = vpop.f32.mrb[1].mxu0  ;;  %v1358_v10 = vpop.f32.mrb[1].mxu1 }
 0x1b9   :  { %v1367_v24 = vadd.f32 %v1317_v9, %v1315_v60  ;;  %v1319_v11 = vpop.f32.mrb[2].mxu0  ;;  %v1360_v36 = vpop.f32.mrb[2].mxu1 }
 0x1ba   :  { %v1320_v5 = vpop.f32.mrb[3].mxu0  ;;  %v1361_v20 = vpop.f32.mrb[3].mxu1 }
 0x1bb   :  { %v1368_v25 = vadd.f32 %v1367_v24, %v1356_v16 }
 0x1bd   :  { %v1369_v17 = vadd.f32 %v1368_v25, %v1358_v10 }
 0x1bf   :  { %1370 = vadd.xlane.f32.xlu0 %v1369_v17 }
 0x24c   :  { %v1371_v26 = vpop.xlane.xlu0 %1370 }
 0x24d   :  { %v1372_v34 = vmul.f32 0.001953125, %v1371_v26 }
 0x24f   :  { %v1373_v28 = vsub.f32 %v1315_v60, %v1372_v34  ;;  %v1374_v39 = vsub.f32 %v1317_v9, %v1372_v34  ;;  %v1375_v41 = vsub.f32 %v1356_v16, %v1372_v34  ;;  %v1376_v6 = vsub.f32 %v1358_v10, %v1372_v34  ;;  %v1387_v60 = vld [vmem:[%s3595_s3] sm:$0xff] }
 0x251   :  { %v1377_v7 = vmul.f32 %v1373_v28, %v1373_v28  ;;  %v1378_v42 = vmul.f32 %v1374_v39, %v1374_v39  ;;  %v1379_v23 = vmul.f32 %v1375_v41, %v1375_v41  ;;  %v1380_v52 = vmul.f32 %v1376_v6, %v1376_v6 }
 0x253   :  { %v1381_v44 = vadd.f32 %v1378_v42, %v1377_v7 }
 0x255   :  { %v1382_v53 = vadd.f32 %v1381_v44, %v1379_v23 }
 0x257   :  { %v1383_v57 = vadd.f32 %v1382_v53, %v1380_v52 }
 0x259   :  { %1384 = vadd.xlane.f32.xlu1 %v1383_v57 }
 0x26a   :  { %1403 = vperm.xlu1 %2826, %v1400_v2  }
 0x2e6   :  { %v1385_v21 = vpop.xlane.xlu1 %1384 }
 0x2e7   :  { %v1386_v59 = vmul.f32 0.001953125, %v1385_v21 }
 0x2e9   :  { %v1388_v24 = vadd.f32 1e-05, %v1386_v59 }
 0x2ea   :  { %v1404_v11 = vpop.permute.xlu1 %1403 }
 0x2eb   :  { %2837 = vrsqrt.f32 %v1388_v24 }
 0x2f5   :  { %v2838_v16 = vpop.eup %2837 }
 0x2f6   :  { %v1390_v9 = vmul.f32 %v2838_v16, %v1387_v60 }
 0x2f8   :  { %1393 = vperm.xlu0 %2825, %v1390_v9  }
 0x377   :  { %v1394_v10 = vpop.permute.xlu0 %1393 }
 0x378   :  { %v1396_v36 = vmul.f32 %v1394_v10, %v1373_v28  ;;  %v1397_v5 = vmul.f32 %v1394_v10, %v1374_v39  ;;  %v1399_v20 = vmul.f32 %v1394_v10, %v1376_v6  ;;  %v1398_v42 = vmul.f32 %v1394_v10, %v1375_v41 }
 0x37a   :  { %v1406_v25 = vadd.f32 %v1404_v11, %v1396_v36  ;;  %v1407_v17 = vadd.f32 %v1404_v11, %v1397_v5  ;;  %v1409_v26 = vadd.f32 %v1404_v11, %v1399_v20  ;;  %v1408_v28 = vadd.f32 %v1404_v11, %v1398_v42 }
 0x37c   :  { %v1411_v34 = vmax.f32 %v1407_v17, 0.0  ;;  %v1413_v7 = vmax.f32 %v1409_v26, 0.0  ;;  %v1410_v23 = vmax.f32 %v1406_v25, 0.0  ;;  %v1412_v41 = vmax.f32 %v1408_v28, 0.0 }
 0x37e   :  { %v3332_v44 = vpack.c.bf16 %v1411_v34, %v1411_v34  ;;  %v3334_v52 = vpack.c.bf16 %v1413_v7, %v1413_v7  ;;  %v3340_v39 = vpack.c.bf16 %v1410_v23, %v1410_v23  ;;  %v3350_v6 = vpack.c.bf16 %v1412_v41, %v1412_v41 }
 0x380   :  { %1445 = vrot.lane.b32.xlu1 %v3334_v52, %s2865_s9  ;;  %1426 = vrot.lane.b32.xlu0 %v3332_v44, %s2867_s0 }
 0x384   :  { %1665 = vrot.lane.b32.xlu0 %v3334_v52, %s2868_s10  ;;  %1447 = vrot.lane.b32.xlu1 %v3340_v39, %s2865_s9 }
 0x388   :  { %1669 = vrot.lane.b32.xlu0 %v3332_v44, %s2868_s10  ;;  %1449 = vrot.lane.b32.xlu1 %v3332_v44, %s2865_s9 }
 0x38c   :  { %1790 = vrot.lane.b32.xlu0 %v3334_v52, %s2869_s11  ;;  %1451 = vrot.lane.b32.xlu1 %v3350_v6, %s2865_s9 }
 0x390   :  { %1794 = vrot.lane.b32.xlu0 %v3332_v44, %s2869_s11  ;;  %1419 = vrot.lane.b32.xlu1 %v3334_v52, %s2867_s0 }
 0x394   :  { %2022 = vrot.lane.b32.xlu0 %v3340_v39, %s2870_s12  ;;  %1424 = vrot.lane.b32.xlu1 %v3340_v39, %s2867_s0 }
 0x398   :  { %2026 = vrot.lane.b32.xlu0 %v3350_v6, %s2870_s12  ;;  %1428 = vrot.lane.b32.xlu1 %v3350_v6, %s2867_s0 }
 0x39c   :  { %2147 = vrot.lane.b32.xlu0 %v3340_v39, %s2871_s13  ;;  %1667 = vrot.lane.b32.xlu1 %v3340_v39, %s2868_s10 }
 0x3a0   :  { %2151 = vrot.lane.b32.xlu0 %v3350_v6, %s2871_s13  ;;  %1671 = vrot.lane.b32.xlu1 %v3350_v6, %s2868_s10 }
 0x3a4   :  { %2272 = vrot.lane.b32.xlu0 %v3340_v39, %s2872_s14  ;;  %1792 = vrot.lane.b32.xlu1 %v3340_v39, %s2869_s11 }
 0x3a8   :  { %2276 = vrot.lane.b32.xlu0 %v3350_v6, %s2872_s14  ;;  %1796 = vrot.lane.b32.xlu1 %v3350_v6, %s2869_s11 }
 0x3ac   :  { %2397 = vrot.lane.b32.xlu0 %v3340_v39, %s2873_s15  ;;  %2024 = vrot.lane.b32.xlu1 %v3332_v44, %s2870_s12 }
 0x3b0   :  { %2401 = vrot.lane.b32.xlu0 %v3350_v6, %s2873_s15  ;;  %2028 = vrot.lane.b32.xlu1 %v3334_v52, %s2870_s12 }
 0x3b4   :  { %2149 = vrot.lane.b32.xlu1 %v3332_v44, %s2871_s13 }
 0x3b8   :  { %2153 = vrot.lane.b32.xlu1 %v3334_v52, %s2871_s13 }
 0x3bc   :  { %2274 = vrot.lane.b32.xlu1 %v3332_v44, %s2872_s14 }
 0x3c0   :  { %2278 = vrot.lane.b32.xlu1 %v3334_v52, %s2872_s14 }
 0x3c4   :  { %2399 = vrot.lane.b32.xlu1 %v3332_v44, %s2873_s15 }
 0x3c8   :  { %2403 = vrot.lane.b32.xlu1 %v3334_v52, %s2873_s15 }
 0x3f2   :  { %v1446_v53 = vpop.permute.xlu1 %1445  ;;  %v1427_v16 = vpop.permute.xlu0 %1426 }
 0x3f6   :  { %v1448_v57 = vpop.permute.xlu1 %1447  ;;  %v1666_v17 = vpop.permute.xlu0 %1665 }
 0x3f7   :  { %v1461_v2 = vsel %vm122_vm0, %v1446_v53, %v1448_v57 }
 0x3f8   :  { %v1463_v21 = vmul.bf16 %v1461_v2, %v3034_v31  ;;  %v2642_v31 = vld [vmem:[%s3597_s5 + $0x4] sm:$0xf] }
 0x3fa   :  { %v1450_v59 = vpop.permute.xlu1 %1449  ;;  %v1475_v10 = vsel %vm1473_vm10, %v1463_v21, 0  ;;  %v1670_v42 = vpop.permute.xlu0 %1669 }
 0x3fb   :  { %v1453_v24 = vsel %vm122_vm0, %v1448_v57, %v1450_v59  ;;  %v1444_v57 = vld [vmem:[%s3597_s5] sm:$0xf] }
 0x3fc   :  { %v1464_v60 = vmul.bf16 %v1453_v24, %v3026_v29 }
 0x3fe   :  { %2643 = vmatprep.subr.msk.bf16.mxu0 %vm1473_vm10, %v1464_v60  ;;  %v1452_v9 = vpop.permute.xlu1 %1451  ;;  %v1791_v60 = vpop.permute.xlu0 %1790 }
 0x3ff   :  { %v1454_v11 = vsel %vm122_vm0, %v1450_v59, %v1452_v9  ;;  %v1455_v36 = vsel %vm122_vm0, %v1452_v9, %v1446_v53  ;;  %1487 = vmatpush1.bf16.msra.mxu0 %v1475_v10 }
 0x400   :  { %v1465_v5 = vmul.bf16 %v1454_v11, %v3038_v32  ;;  %v1466_v29 = vmul.bf16 %v1455_v36, %v3030_v30 }
 0x402   :  { %2644 = vmatmul.mubr.msk.bf16.vlgmr.msra.gmra.mrb[4].mxu0 %vm1469_vm11, %v2642_v31  ;;  %2645 = vmatprep.subr.msk.bf16.mxu1 %vm1473_vm10, %v1466_v29  ;;  %v1420_v20 = vpop.permute.xlu1 %1419  ;;  %v1481_v25 = vsel %vm1473_vm10, %v1465_v5, 0 }
 0x403   :  { %1528 = vmatpush1.bf16.msra.mxu1 %v1481_v25  ;;  %1615 = vmatprep.mubr.bf16.mxu0 %v2866_v8  ;;  %v2651_v25 = vld [vmem:[%s3597_s5 + $0x8] sm:$0xf] }
 0x406   :  { %2646 = vmatmul.mubr.msk.bf16.vlgmr.msra.gmra.mrb[4].mxu1 %vm1469_vm11, %v2642_v31  ;;  %v1425_v26 = vpop.permute.xlu1 %1424  ;;  %v1795_v31 = vpop.permute.xlu0 %1794 }
 0x407   :  { %v1430_v34 = vsel %vm59_vm1, %v1425_v26, %v1427_v16  ;;  %v1438_v32 = vsel %vm59_vm1, %v1420_v20, %v1425_v26  ;;  %1656 = vmatprep.mubr.bf16.mxu1 %v2866_v8 }
 0x408   :  { %v1440_v30 = vmul.bf16 %v1438_v32, %v3042_v35  ;;  %v1441_v7 = vmul.bf16 %v1430_v34, %v3069_v54  ;;  %v1916_v34 = vmul.bf16 %v3332_v44, %v3147_v63  ;;  %v1918_v44 = vmul.bf16 %v3334_v52, %v3150_v0 }
 0x409   :  { %v1917_v52 = vmul.bf16 %v3350_v6, %v3171_v19 }
 0x40a   :  { %2647 = vmatprep.subr.msk.bf16.mxu0 %vm1473_vm10, %v1441_v7  ;;  %v1429_v23 = vpop.permute.xlu1 %1428  ;;  %v1572_v28 = vsel %vm1473_vm10, %v1440_v30, 0 }
 0x40b   :  { %v1431_v41 = vsel %vm59_vm1, %v1427_v16, %v1429_v23  ;;  %v1432_v53 = vsel %vm59_vm1, %v1429_v23, %v1420_v20  ;;  %1584 = vmatpush1.bf16.msra.mxu0 %v1572_v28  ;;  %v2656_v28 = vld [vmem:[%s3597_s5 + $0xc] sm:$0xf] }
 0x40c   :  { %v1442_v2 = vmul.bf16 %v1431_v41, %v3073_v55  ;;  %v1443_v35 = vmul.bf16 %v1432_v53, %v3077_v56 }
 0x40e   :  { %2648 = vmatmul.mubr.msk.bf16.vlgmr.msra.gmra.mrb[4].mxu0 %vm1469_vm11, %v1444_v57  ;;  %2649 = vmatprep.subr.msk.bf16.mxu1 %vm1473_vm10, %v1443_v35  ;;  %v1668_v54 = vpop.permute.xlu1 %1667  ;;  %v1578_v21 = vsel %vm1473_vm10, %v1442_v2, 0 }
 0x40f   :  { %v1673_v59 = vsel %vm372_vm4, %v1668_v54, %v1670_v42  ;;  %v1681_v24 = vsel %vm372_vm4, %v1666_v17, %v1668_v54  ;;  %1625 = vmatpush1.bf16.msra.mxu1 %v1578_v21  ;;  %1736 = vmatprep.mubr.bf16.mxu0 %v2866_v8 }
 0x410   :  { %v1683_v16 = vmul.bf16 %v1681_v24, %v3092_v3  ;;  %v1684_v55 = vmul.bf16 %v1673_v59, %v3099_v13 }
 0x412   :  { %2650 = vmatmul.mubr.msk.bf16.vlgmr.msra.gmra.mrb[4].mxu1 %vm1469_vm11, %v1444_v57  ;;  %2652 = vmatprep.subr.msk.bf16.mxu0 %vm1473_vm10, %v1684_v55  ;;  %v1672_v56 = vpop.permute.xlu1 %1671  ;;  %v1693_v9 = vsel %vm1473_vm10, %v1683_v16, 0 }
 0x413   :  { %v1674_v10 = vsel %vm372_vm4, %v1670_v42, %v1672_v56  ;;  %v1675_v11 = vsel %vm372_vm4, %v1672_v56, %v1666_v17  ;;  %1705 = vmatpush1.bf16.msra.mxu0 %v1693_v9  ;;  %1777 = vmatprep.mubr.bf16.mxu1 %v2866_v8 }
 0x414   :  { %v1685_v36 = vmul.bf16 %v1674_v10, %v3102_v14  ;;  %v1686_v3 = vmul.bf16 %v1675_v11, %v3105_v15 }
 0x416   :  { %2654 = vmatprep.subr.msk.bf16.mxu1 %vm1473_vm10, %v1686_v3  ;;  %v1793_v13 = vpop.permute.xlu1 %1792  ;;  %v1699_v5 = vsel %vm1473_vm10, %v1685_v36, 0 }
 0x417   :  { %v1798_v29 = vsel %vm515_vm5, %v1793_v13, %v1795_v31  ;;  %v1806_v20 = vsel %vm515_vm5, %v1791_v60, %v1793_v13  ;;  %1746 = vmatpush1.bf16.msra.mxu1 %v1699_v5 }
 0x418   :  { %v1808_v17 = vmul.bf16 %v1806_v20, %v3124_v45  ;;  %v1809_v14 = vmul.bf16 %v1798_v29, %v3127_v46  ;;  %v2023_v45 = vpop.permute.xlu0 %2022 }
 0x41a   :  { %2653 = vmatmul.mubr.msk.bf16.vlgmr.msra.gmra.mrb[4].mxu0 %vm1469_vm11, %v2651_v25  ;;  %2657 = vmatprep.subr.msk.bf16.mxu0 %vm1473_vm10, %v1809_v14  ;;  %v1797_v15 = vpop.permute.xlu1 %1796  ;;  %v1818_v26 = vsel %vm1473_vm10, %v1808_v17, 0 }
 0x41b   :  { %v1799_v32 = vsel %vm515_vm5, %v1795_v31, %v1797_v15  ;;  %v1800_v30 = vsel %vm515_vm5, %v1797_v15, %v1791_v60  ;;  %1830 = vmatpush1.bf16.msra.mxu0 %v1818_v26  ;;  %1861 = vmatprep.mubr.bf16.mxu0 %v2866_v8 }
 0x41c   :  { %v1810_v46 = vmul.bf16 %v1799_v32, %v3130_v47  ;;  %v1811_v7 = vmul.bf16 %v1800_v30, %v3133_v48  ;;  %2662 = vmatprep.subr.msk.bf16.mxu0 %vm1473_vm10, %v1916_v34  ;;  %v2027_v47 = vpop.permute.xlu0 %2026  ;;  %v1915_v48 = vmul.bf16 %v3340_v39, %v3168_v18 }
 0x41e   :  { %2655 = vmatmul.mubr.msk.bf16.vlgmr.msra.gmra.mrb[4].mxu1 %vm1469_vm11, %v2651_v25  ;;  %2659 = vmatprep.subr.msk.bf16.mxu1 %vm1473_vm10, %v1811_v7  ;;  %v2025_v42 = vpop.permute.xlu1 %2024  ;;  %v1824_v63 = vsel %vm1473_vm10, %v1810_v46, 0  ;;  %v1925_v0 = vsel %vm1473_vm10, %v1915_v48, 0 }
 0x41f   :  { %1871 = vmatpush1.bf16.msra.mxu1 %v1824_v63  ;;  %1902 = vmatprep.mubr.bf16.mxu1 %v2866_v8  ;;  %v2031_v23 = vsel %vm781_vm6, %v2025_v42, %v2027_v47  ;;  %v2030_v35 = vsel %vm781_vm6, %v2023_v45, %v2025_v42 }
 0x420   :  { %2664 = vmatprep.subr.msk.bf16.mxu1 %vm1473_vm10, %v1918_v44  ;;  %v2041_v53 = vmul.bf16 %v2031_v23, %v3180_v27  ;;  %v2148_v18 = vpop.permute.xlu0 %2147  ;;  %v1931_v27 = vsel %vm1473_vm10, %v1917_v52, 0  ;;  %v2040_v6 = vmul.bf16 %v2030_v35, %v3197_v49  ;;  %v2676_v44 = vld [vmem:[%s3597_s5 + $0x1c] sm:$0xf] }
 0x422   :  { %v2029_v41 = vpop.permute.xlu1 %2028  ;;  %v2050_v16 = vsel %vm1473_vm10, %v2040_v6, 0 }
 0x423   :  { %v2038_v57 = vsel %vm781_vm6, %v2029_v41, %v2023_v45  ;;  %v2032_v54 = vsel %vm781_vm6, %v2027_v47, %v2029_v41 }
 0x424   :  { %v2043_v39 = vmul.bf16 %v2038_v57, %v3183_v33  ;;  %v2152_v19 = vpop.permute.xlu0 %2151  ;;  %v2661_v33 = vld [vmem:[%s3597_s5 + $0x10] sm:$0xf]  ;;  %v2042_v24 = vmul.bf16 %v2032_v54, %v3202_v51 }
 0x426   :  { %2658 = vmatmul.mubr.msk.bf16.vlgmr.msra.gmra.mrb[4].mxu0 %vm1469_vm11, %v2656_v28  ;;  %v2150_v2 = vpop.permute.xlu1 %2149  ;;  %v2056_v51 = vsel %vm1473_vm10, %v2042_v24, 0 }
 0x427   :  { %1937 = vmatpush1.bf16.msra.mxu0 %v1925_v0  ;;  %1968 = vmatprep.mubr.bf16.mxu0 %v2866_v8  ;;  %v2156_v21 = vsel %vm924_vm7, %v2150_v2, %v2152_v19 }
 0x428   :  { %2667 = vmatprep.subr.msk.bf16.mxu0 %vm1473_vm10, %v2041_v53  ;;  %v2166_v60 = vmul.bf16 %v2156_v21, %v3212_v50  ;;  %v2273_v49 = vpop.permute.xlu0 %2272  ;;  %v2155_v50 = vsel %vm924_vm7, %v2148_v18, %v2150_v2 }
 0x429   :  { %v2165_v11 = vmul.bf16 %v2155_v50, %v3229_v38  ;;  %v2542_v50 = vld [vmem:[%s3598_s6] sm:$0xff] }
 0x42a   :  { %2660 = vmatmul.mubr.msk.bf16.vlgmr.msra.gmra.mrb[4].mxu1 %vm1469_vm11, %v2656_v28  ;;  %v2154_v59 = vpop.permute.xlu1 %2153 }
 0x42b   :  { %1978 = vmatpush1.bf16.msra.mxu1 %v1931_v27  ;;  %2009 = vmatprep.mubr.bf16.mxu1 %v2866_v8  ;;  %v2163_v55 = vsel %vm924_vm7, %v2154_v59, %v2148_v18  ;;  %v2157_v36 = vsel %vm924_vm7, %v2152_v19, %v2154_v59  ;;  %v2175_v29 = vsel %vm1473_vm10, %v2165_v11, 0 }
 0x42c   :  { %2669 = vmatprep.subr.msk.bf16.mxu1 %vm1473_vm10, %v2043_v39  ;;  %v2168_v56 = vmul.bf16 %v2163_v55, %v3215_v62  ;;  %v2277_v10 = vpop.permute.xlu0 %2276  ;;  %v2666_v62 = vld [vmem:[%s3597_s5 + $0x14] sm:$0xf]  ;;  %v2167_v13 = vmul.bf16 %v2157_v36, %v3234_v4 }
 0x42e   :  { %v2275_v9 = vpop.permute.xlu1 %2274  ;;  %v2181_v4 = vsel %vm1473_vm10, %v2167_v13, 0 }
 0x42f   :  { %v2281_v3 = vsel %vm1067_vm8, %v2275_v9, %v2277_v10 }
 0x430   :  { %v2291_v5 = vmul.bf16 %v2281_v3, %v3243_v40  ;;  %v2398_v38 = vpop.permute.xlu0 %2397  ;;  %v2280_v40 = vsel %vm1067_vm8, %v2273_v49, %v2275_v9 }
 0x431   :  { %v2290_v15 = vmul.bf16 %v2280_v40, %v3266_v61 }
 0x432   :  { %2663 = vmatmul.mubr.msk.bf16.vlgmr.msra.gmra.mrb[4].mxu0 %vm1469_vm11, %v2661_v33  ;;  %v2279_v31 = vpop.permute.xlu1 %2278 }
 0x433   :  { %2062 = vmatpush1.bf16.msra.mxu0 %v2050_v16  ;;  %2093 = vmatprep.mubr.bf16.mxu0 %v2866_v8  ;;  %v2288_v20 = vsel %vm1067_vm8, %v2279_v31, %v2273_v49  ;;  %v2282_v26 = vsel %vm1067_vm8, %v2277_v10, %v2279_v31  ;;  %v2300_v46 = vsel %vm1473_vm10, %v2290_v15, 0  ;;  %v2555_v49 = vld [vmem:[%s3599_s7] sm:$0xff]  ;;  %s2579_s7 = sshll.u32 %s2874_s25, 4  ;;  %s2580_s7 = int_to_ptr.vmem [resolvable:$true] %s2579_s7 }
 0x434   :  { %2672 = vmatprep.subr.msk.bf16.mxu0 %vm1473_vm10, %v2166_v60  ;;  %v2293_v25 = vmul.bf16 %v2288_v20, %v3246_v37  ;;  %v2402_v14 = vpop.permute.xlu0 %2401  ;;  %v2671_v37 = vld [vmem:[%s3597_s5 + $0x18] sm:$0xf]  ;;  %v2292_v30 = vmul.bf16 %v2282_v26, %v3271_v1  ;;  %s2841_s6 = scalar_lea.vmem %s2580_s7, 512  ;;  %p2846_p1 = scmp.lt.s32.totalorder %s2580_s7, %s2580_s7 }
 0x435   :  { %p2842_p0 = scmp.ne.s32.totalorder %s2580_s7, %s2841_s6  ;;  %p2847_p2 = scmp.lt.s32.totalorder %s2841_s6, %s2841_s6 }
 0x436   :  { %2665 = vmatmul.mubr.msk.bf16.vlgmr.msra.gmra.mrb[4].mxu1 %vm1469_vm11, %v2661_v33  ;;  %v2400_v17 = vpop.permute.xlu1 %2399  ;;  %v2306_v42 = vsel %vm1473_vm10, %v2292_v30, 0 }
 0x437   :  { %2103 = vmatpush1.bf16.msra.mxu1 %v2056_v51  ;;  %2134 = vmatprep.mubr.bf16.mxu1 %v2866_v8  ;;  %v2406_v34 = vsel %vm1210_vm9, %v2400_v17, %v2402_v14  ;;  %v2405_v1 = vsel %vm1210_vm9, %v2398_v38, %v2400_v17  ;;  %p2848_p3 = por %p2847_p2, %p2846_p1 }
 0x438   :  { %2674 = vmatprep.subr.msk.bf16.mxu1 %vm1473_vm10, %v2168_v56  ;;  %v2416_v45 = vmul.bf16 %v2406_v34, %v3280_v58  ;;  %v2415_v58 = vmul.bf16 %v2405_v1, %v3297_v22  ;;  %v2681_v22 = vld [vmem:[%s3597_s5 + $0x20] sm:$0xf] }
 0x439   :  { %p2849_p4 = pnand %p2848_p3, %p2842_p0 }
 0x43a   :  { %v2404_v32 = vpop.permute.xlu1 %2403  ;;  %v2425_v47 = vsel %vm1473_vm10, %v2415_v58, 0 }
 0x43b   :  { %v2413_v7 = vsel %vm1210_vm9, %v2404_v32, %v2398_v38  ;;  %v2407_v63 = vsel %vm1210_vm9, %v2402_v14, %v2404_v32 }
 0x43c   :  { %v2418_v61 = vmul.bf16 %v2413_v7, %v3283_v12  ;;  %v2417_v12 = vmul.bf16 %v2407_v63, %v3302_v43 }
 0x43e   :  { %2668 = vmatmul.mubr.msk.bf16.vlgmr.msra.gmra.mrb[4].mxu0 %vm1469_vm11, %v2666_v62  ;;  %v2431_v48 = vsel %vm1473_vm10, %v2417_v12, 0 }
 0x43f   :  { %2187 = vmatpush1.bf16.msra.mxu0 %v2175_v29  ;;  %2218 = vmatprep.mubr.bf16.mxu0 %v2866_v8 }
 0x440   :  { %2677 = vmatprep.subr.msk.bf16.mxu0 %vm1473_vm10, %v2291_v5 }
 0x442   :  { %2670 = vmatmul.mubr.msk.bf16.vlgmr.msra.gmra.mrb[4].mxu1 %vm1469_vm11, %v2666_v62 }
 0x443   :  { %2228 = vmatpush1.bf16.msra.mxu1 %v2181_v4  ;;  %2259 = vmatprep.mubr.bf16.mxu1 %v2866_v8 }
 0x444   :  { %2679 = vmatprep.subr.msk.bf16.mxu1 %vm1473_vm10, %v2293_v25 }
 0x44a   :  { %2673 = vmatmul.mubr.msk.bf16.vlgmr.msra.gmra.mrb[4].mxu0 %vm1469_vm11, %v2671_v37 }
 0x44b   :  { %2312 = vmatpush1.bf16.msra.mxu0 %v2300_v46  ;;  %2343 = vmatprep.mubr.bf16.mxu0 %v2866_v8 }
 0x44c   :  { %2682 = vmatprep.subr.msk.bf16.mxu0 %vm1473_vm10, %v2416_v45 }
 0x44e   :  { %2675 = vmatmul.mubr.msk.bf16.vlgmr.msra.gmra.mrb[4].mxu1 %vm1469_vm11, %v2671_v37 }
 0x44f   :  { %2353 = vmatpush1.bf16.msra.mxu1 %v2306_v42  ;;  %2384 = vmatprep.mubr.bf16.mxu1 %v2866_v8 }
 0x450   :  { %2684 = vmatprep.subr.msk.bf16.mxu1 %vm1473_vm10, %v2418_v61 }
 0x456   :  { %2678 = vmatmul.mubr.msk.bf16.vlgmr.msra.gmra.mrb[4].mxu0 %vm1469_vm11, %v2676_v44 }
 0x457   :  { %2437 = vmatpush1.bf16.msra.mxu0 %v2425_v47  ;;  %2468 = vmatprep.mubr.bf16.mxu0 %v2866_v8 }
 0x45a   :  { %2680 = vmatmul.mubr.msk.bf16.vlgmr.msra.gmra.mrb[4].mxu1 %vm1469_vm11, %v2676_v44 }
 0x45b   :  { %2478 = vmatpush1.bf16.msra.mxu1 %v2431_v48  ;;  %2509 = vmatprep.mubr.bf16.mxu1 %v2866_v8 }
 0x462   :  { %2683 = vmatmul.mubr.msk.bf16.vlgmr.msra.gmra.mrb[4].mxu0 %vm1469_vm11, %v2681_v22 }
 0x466   :  { %2685 = vmatmul.mubr.msk.bf16.vlgmr.msra.gmra.mrb[4].mxu1 %vm1469_vm11, %v2681_v22 }
 0x535   :  { %v2470_v43 = vpop.f32.mrb[4].mxu0 }
 0x536   :  { %v2472_v23 = vpop.f32.mrb[5].mxu0 }
 0x537   :  { %v2522_v28 = vadd.f32 %v2472_v23, %v2470_v43  ;;  %v2474_v41 = vpop.f32.mrb[6].mxu0 }
 0x538   :  { %v2475_v53 = vpop.f32.mrb[7].mxu0 }
 0x539   :  { %v2511_v0 = vpop.f32.mrb[4].mxu1 }
 0x53a   :  { %v2523_v52 = vadd.f32 %v2522_v28, %v2511_v0  ;;  %v2513_v57 = vpop.f32.mrb[5].mxu1 }
 0x53b   :  { %v2515_v18 = vpop.f32.mrb[6].mxu1 }
 0x53c   :  { %v2516_v39 = vpop.f32.mrb[7].mxu1  ;;  %v2524_v2 = vadd.f32 %v2523_v52, %v2513_v57 }
 0x53e   :  { %2525 = vadd.xlane.f32.xlu0 %v2524_v2 }
 0x5cb   :  { %v2526_v8 = vpop.xlane.xlu0 %2525 }
 0x5cc   :  { %v2527_v27 = vmul.f32 0.001953125, %v2526_v8 }
 0x5ce   :  { %v2528_v35 = vsub.f32 %v2470_v43, %v2527_v27  ;;  %v2529_v19 = vsub.f32 %v2472_v23, %v2527_v27  ;;  %v2530_v6 = vsub.f32 %v2511_v0, %v2527_v27  ;;  %v2531_v54 = vsub.f32 %v2513_v57, %v2527_v27 }
 0x5d0   :  { %v2532_v21 = vmul.f32 %v2528_v35, %v2528_v35  ;;  %v2533_v33 = vmul.f32 %v2529_v19, %v2529_v19  ;;  %v2534_v59 = vmul.f32 %v2530_v6, %v2530_v6  ;;  %v2535_v60 = vmul.f32 %v2531_v54, %v2531_v54 }
 0x5d2   :  { %v2536_v24 = vadd.f32 %v2533_v33, %v2532_v21 }
 0x5d4   :  { %v2537_v16 = vadd.f32 %v2536_v24, %v2534_v59 }
 0x5d6   :  { %v2538_v55 = vadd.f32 %v2537_v16, %v2535_v60 }
 0x5d8   :  { %2539 = vadd.xlane.f32.xlu1 %v2538_v55 }
 0x5e9   :  { %2558 = vperm.xlu1 %2826, %v2555_v49  }
 0x665   :  { %v2540_v56 = vpop.xlane.xlu1 %2539 }
 0x666   :  { %v2541_v9 = vmul.f32 0.001953125, %v2540_v56 }
 0x668   :  { %v2543_v51 = vadd.f32 1e-05, %v2541_v9 }
 0x669   :  { %v2559_v5 = vpop.permute.xlu1 %2558 }
 0x66a   :  { %2839 = vrsqrt.f32 %v2543_v51 }
 0x674   :  { %v2840_v10 = vpop.eup %2839 }
 0x675   :  { %v2545_v11 = vmul.f32 %v2840_v10, %v2542_v50 }
 0x677   :  { %2548 = vperm.xlu0 %2825, %v2545_v11  }
 0x6f6   :  { %v2549_v36 = vpop.permute.xlu0 %2548 }
 0x6f7   :  { %v2551_v3 = vmul.f32 %v2549_v36, %v2528_v35  ;;  %v2552_v62 = vmul.f32 %v2549_v36, %v2529_v19  ;;  %v2553_v31 = vmul.f32 %v2549_v36, %v2530_v6  ;;  %v2554_v13 = vmul.f32 %v2549_v36, %v2531_v54 }
 0x6f9   :  { %v2561_v29 = vadd.f32 %v2559_v5, %v2551_v3  ;;  %v2562_v20 = vadd.f32 %v2559_v5, %v2552_v62  ;;  %v2563_v38 = vadd.f32 %v2559_v5, %v2553_v31  ;;  %v2564_v25 = vadd.f32 %v2559_v5, %v2554_v13 }
 0x6fb   :  { %v2565_v17 = vmax.f32 %v2561_v29, 0.0  ;;  %v2566_v4 = vmax.f32 %v2562_v20, 0.0  ;;  %v2567_v40 = vmax.f32 %v2563_v38, 0.0  ;;  %v2568_v14 = vmax.f32 %v2564_v25, 0.0 }
 0x6fd   :  { %2569 = vst [vmem:[#allocation2] sm:$0xff] %v2565_v17  ;;  %2570 = vst [vmem:[#allocation2 + $0x8] sm:$0xff] %v2566_v4 }
 0x6fe   :  { %2572 = vst [vmem:[#allocation2 + $0x10] sm:$0xff] %v2567_v40  ;;  %2573 = vst [vmem:[#allocation2 + $0x18] sm:$0xff] %v2568_v14 }
 0x6ff   :  { %2852 = shalt.err (!%p2849_p4)
}
 0x700   :  { %s2853_s27 = scalar_lea.hbm %s3600_s8, 512 }
 0x701   :  { %p2854_p5 = scmp.ne.s32.totalorder %s3600_s8, %s2853_s27  ;;  %p2857_p6 = scmp.lt.u32.totalorder %s2853_s27, %s3600_s8 }
 0x703   :  { %p2859_p7 = pnand %p2857_p6, %p2854_p5 }
 0x705   :  { %2862 = shalt.err (!%p2859_p7)
}
 0x706   :  { %s2875_s10 = smov 256  }
 0x707   :  { %2585 = dma.vmem_to_hbm [thread:$0]  %s2580_s7, 512, %s3600_s8, [#allocation3], %s2875_s10, %s2875_s10, %s2865_s9  }
 0x708   :  { %2863 = dma.done.wait [#allocation3], 512  }
 0x709   :  { %2864 = vsyncadd [#allocation3], 4294966784 }
 0x70a   :  { %2589 = vsyncpa [#allocation3], 1 }

</bundles_post_ra>
